<compile_context>
chip_gen: v6e
topology: v6e:2x2x1
jax: 0.10.0
libtpu: 0.0.40
codegen_flags: <defaults>
</compile_context>

<pallas_src>
import functools
import math

import jax
import jax.numpy as jnp
from jax.experimental import pallas as pl
from jax.experimental.pallas import tpu as pltpu

_MIB = 1024 * 1024
_LANE = 128
_SUBLANE = 8


def _round_up(x, m):
    return ((x + m - 1) // m) * m


def _device_params():
    """(physical VMEM bytes, MXU contraction depth, target output rows per tile)."""
    kind = ""
    try:
        kind = jax.devices()[0].device_kind.lower()
    except Exception:
        pass
    if "v7" in kind:
        return 64 * _MIB, 256, 512
    if "v6" in kind:
        return 128 * _MIB, 256, 1024
    if any(g in kind for g in ("v5", "v4", "v3", "v2")):
        return 128 * _MIB, 128, 512
    return 64 * _MIB, 128, 512          # unknown backend: conservative


def _tcn_kernel_s1(x_ref, w_ref, shift_ref, o_ref, *, K, Vp, t_tile, use_im2col):
    """stride == 1 path; (T, V) flattened to rows in the wrapper.

    x_ref:     (1, T_src*Vp, C_in_p)   zero-padded input, resident per n
    w_ref:     (K*C_in_p, C_out_p) if use_im2col else (K, C_in, C_out_p), BN-folded
    shift_ref: (1, C_out_p)            folded conv-bias + BN shift (f32)
    o_ref:     (1, t_tile*Vp, C_out_p) lane-dense output tile
    """
    ti = pl.program_id(1)
    rows = t_tile * Vp
    if use_im2col:
        cols = []
        for k in range(K):                                   # static unroll over taps
            start = pl.multiple_of(ti * rows + k * Vp, _SUBLANE)
            cols.append(x_ref[0, pl.ds(start, rows), :])
        patch = jnp.concatenate(cols, axis=-1)               # (rows, K*C_in_p), lane aligned
        acc = jnp.dot(patch, w_ref[...], preferred_element_type=jnp.float32)
    else:
        acc = jnp.zeros((rows, w_ref.shape[-1]), jnp.float32)
        for k in range(K):                                   # static unroll over taps
            start = pl.multiple_of(ti * rows + k * Vp, _SUBLANE)
            xs = x_ref[0, pl.ds(start, rows), :]
            acc = acc + jnp.dot(xs, w_ref[k], preferred_element_type=jnp.float32)
    o_ref[0] = (acc + shift_ref[...]).astype(o_ref.dtype)


def _tcn_kernel_sg(x_ref, w_ref, shift_ref, o_ref, *, K, stride, t_tile, use_im2col):
    """stride > 1 path; T regrouped as (Tg, stride) in the wrapper so each tap is a
    contiguous unit-stride slice along Tg (no span loads / strided re-slice).

    x_ref:     (1, Tg, stride, Vp, C_in_p)
    w_ref:     (K*C_in_p, C_out_p) if use_im2col else (K, C_in, C_out_p)
    shift_ref: (1, C_out_p)
    o_ref:     (1, t_tile, Vp, C_out_p)
    """
    ti = pl.program_id(1)
    t0 = ti * t_tile
    dn = (((2,), (0,)), ((), ()))
    if use_im2col:
        cols = []
        for k in range(K):                                   # static unroll over taps
            q, r = divmod(k, stride)
            cols.append(x_ref[0, pl.ds(t0 + q, t_tile), r, :, :])   # (t_tile, Vp, C_in_p)
        patch = jnp.concatenate(cols, axis=-1)               # (t_tile, Vp, K*C_in_p)
        acc = jax.lax.dot_general(patch, w_ref[...], dimension_numbers=dn,
                                  preferred_element_type=jnp.float32)
    else:
        acc = jnp.zeros(o_ref.shape[1:], jnp.float32)
        for k in range(K):
            q, r = divmod(k, stride)
            xs = x_ref[0, pl.ds(t0 + q, t_tile), r, :, :]
            acc = acc + jax.lax.dot_general(xs, w_ref[k], dimension_numbers=dn,
                                            preferred_element_type=jnp.float32)
    o_ref[0] = (acc + shift_ref[...]).astype(o_ref.dtype)


def unit_tcn_forward(x_nchw, conv_w, conv_b, bn_gamma, bn_beta, bn_mean, bn_var,
                     *, stride=1, eps=1e-5, t_tile=None, compute_dtype=None,
                     use_im2col=None):
    """Inference forward of unit_tcn: y = BN(Conv2d_(K,1)(x)).

    x_nchw: (N, C_in, T, V); conv_w: (C_out, C_in, K, 1); conv_b: (C_out,).
    compute_dtype defaults to bfloat16 for the MXU operands (accumulation stays f32,
    stored output keeps x's dtype).  Pass jnp.float32 for strict f32 parity.
    """
    N, C_in, T, V = x_nchw.shape
    C_out, _, K, _ = conv_w.shape
    pad = (K - 1) // 2
    T_out = (T + 2 * pad - K) // stride + 1
    out_dtype = x_nchw.dtype
    if compute_dtype is None:
        compute_dtype = jnp.bfloat16
    csize = jnp.dtype(compute_dtype).itemsize
    osize = jnp.dtype(out_dtype).itemsize

    vmem_bytes, mxu_depth, target_rows = _device_params()

    # ---- lane / sublane padding of the channel and joint axes ----------------------
    C_out_p = _round_up(C_out, _LANE)                 # lane-dense (unmasked) stores
    Vp = _round_up(V, _SUBLANE)                       # sublane-aligned im2col slices
    if use_im2col is None:
        use_im2col = C_in < mxu_depth                 # fuse taps only while it adds MXU fill
    C_in_p = _round_up(C_in, _LANE) if use_im2col else C_in

    # ---- T tile: biggest tile whose live set fits this generation's VMEM budget ----
    if t_tile is None:
        t_src_est = (T_out - 1) * stride + K + stride
        fixed = (2 * t_src_est * Vp * C_in_p * csize          # resident input (dbl buffered)
                 + 2 * K * C_in_p * C_out_p * csize           # weights (dbl buffered)
                 + 2 * C_out_p * 4)                           # shift
        per_row = (2 * C_out_p * osize + 4 * C_out_p          # out tile (x2) + f32 acc
                   + (K if use_im2col else 2) * C_in_p * csize)
        budget = int(0.7 * vmem_bytes)
        rows_cap = (budget - fixed) // per_row if budget > fixed else Vp
        rows = max(Vp, min(target_rows, int(rows_cap)))
        t_tile = rows // Vp
    t_tile = max(1, min(int(t_tile), T_out))
    num_t_tiles = -(-T_out // t_tile)
    T_pad_out = num_t_tiles * t_tile

    # ---- BN folding: scale -> weights, (bias, mean, beta) -> per-channel shift -----
    scale = (bn_gamma / jnp.sqrt(bn_var + eps)).astype(jnp.float32)            # (C_out,)
    shift = (bn_beta - bn_mean * scale + conv_b * scale).astype(jnp.float32)
    shift = jnp.pad(shift, (0, C_out_p - C_out)).reshape(1, C_out_p)
    w_kio = (jnp.transpose(conv_w[..., 0], (2, 1, 0)).astype(jnp.float32)
             * scale[None, None, :])                                           # (K, C_in, C_out)
    w_kio = jnp.pad(w_kio, ((0, 0), (0, C_in_p - C_in), (0, C_out_p - C_out)))
    w_kio = w_kio.astype(compute_dtype)                                        # (K, C_in_p, C_out_p)
    w_arg = w_kio.reshape(K * C_in_p, C_out_p) if use_im2col else w_kio

    # ---- layout + zero padding (XLA glue, one fused HBM pass; see TODO(synk)) ------
    x_tvc = jnp.transpose(x_nchw, (0, 2, 3, 1)).astype(compute_dtype)          # (N, T, V, C_in)
    T_src = _round_up(max((T_pad_out - 1) * stride + K, T + pad), stride)
    pad_back = T_src - T - pad
    x_padded = jnp.pad(x_tvc, ((0, 0), (pad, pad_back), (0, Vp - V), (0, C_in_p - C_in)))

    # ---- compiler VMEM budget from the actual shapes --------------------------------
    rows = t_tile * Vp
    need = (2 * T_src * Vp * C_in_p * csize
            + 2 * K * C_in_p * C_out_p * csize + 2 * C_out_p * 4
            + 2 * rows * C_out_p * osize + rows * C_out_p * 4
            + rows * (K if use_im2col else 1) * C_in_p * csize)
    vmem_limit = int(min(0.9 * vmem_bytes, max(1.5 * need + 4 * _MIB, 32 * _MIB)))
    cparams = pltpu.CompilerParams(
        dimension_semantics=("parallel", "parallel"),
        vmem_limit_bytes=vmem_limit,
    )

    if use_im2col:
        w_spec = pl.BlockSpec((K * C_in_p, C_out_p), lambda n, ti: (0, 0))
    else:
        w_spec = pl.BlockSpec((K, C_in_p, C_out_p), lambda n, ti: (0, 0, 0))
    shift_spec = pl.BlockSpec((1, C_out_p), lambda n, ti: (0, 0))

    if stride == 1:
        x_flat = x_padded.reshape(N, T_src * Vp, C_in_p)          # contiguous collapse: free
        kernel = functools.partial(_tcn_kernel_s1, K=K, Vp=Vp, t_tile=t_tile,
                                   use_im2col=use_im2col)
        out_flat = pl.pallas_call(
            kernel,
            out_shape=jax.ShapeDtypeStruct((N, T_pad_out * Vp, C_out_p), out_dtype),
            grid=(N, num_t_tiles),
            in_specs=[
                # block index constant across ti -> input stays resident in VMEM per n
                pl.BlockSpec((1, T_src * Vp, C_in_p), lambda n, ti: (n, 0, 0)),
                w_spec,
                shift_spec,
            ],
            out_specs=pl.BlockSpec((1, t_tile * Vp, C_out_p), lambda n, ti: (n, ti, 0)),
            compiler_params=cparams,
        )(x_flat, w_arg, shift)
        out_tvc = out_flat.reshape(N, T_pad_out, Vp, C_out_p)
    else:
        Tg = T_src // stride
        x_grp = x_padded.reshape(N, Tg, stride, Vp, C_in_p)       # dim split: free
        kernel = functools.partial(_tcn_kernel_sg, K=K, stride=stride, t_tile=t_tile,
                                   use_im2col=use_im2col)
        out_tvc = pl.pallas_call(
            kernel,
            out_shape=jax.ShapeDtypeStruct((N, T_pad_out, Vp, C_out_p), out_dtype),
            grid=(N, num_t_tiles),
            in_specs=[
                pl.BlockSpec((1, Tg, stride, Vp, C_in_p), lambda n, ti: (n, 0, 0, 0, 0)),
                w_spec,
                shift_spec,
            ],
            out_specs=pl.BlockSpec((1, t_tile, Vp, C_out_p), lambda n, ti: (n, ti, 0, 0)),
            compiler_params=cparams,
        )(x_grp, w_arg, shift)

    out_tvc = out_tvc[:, :T_out, :V, :C_out]
    # back to NCHW for the PyTorch-compatible interface (see TODO(synk) in header)
    return jnp.transpose(out_tvc, (0, 3, 1, 2))


def _reference(x_nchw, conv_w, conv_b, bn_gamma, bn_beta, bn_mean, bn_var,
               *, stride=1, eps=1e-5):
    K = conv_w.shape[2]
    pad = (K - 1) // 2
    y = jax.lax.conv_general_dilated(
        x_nchw, conv_w,
        window_strides=(stride, 1),
        padding=((pad, pad), (0, 0)),
        dimension_numbers=("NCHW", "OIHW", "NCHW"),
    )
    y = y + conv_b[None, :, None, None]
    inv = bn_gamma / jnp.sqrt(bn_var + eps)
    return (y - bn_mean[None, :, None, None]) * inv[None, :, None, None] \
        + bn_beta[None, :, None, None]


if __name__ == "__main__":
    key = jax.random.PRNGKey(0)
    N, C_in, T, V = 2, 4, 16, 25          # V=25 exercises the sublane pad (V -> 32)
    C_out, K = 8, 9                       # C_out=8 exercises the lane pad (C_out -> 128)

    k_x, k_w, k_m, k_v = jax.random.split(key, 4)
    x = jax.random.normal(k_x, (N, C_in, T, V), dtype=jnp.float32)

    # conv_init: kaiming_normal_(fan_out) -> std = sqrt(2 / (C_out * K * 1)); bias = 0
    fan_out = C_out * K * 1
    conv_w = jax.random.normal(k_w, (C_out, C_in, K, 1), jnp.float32) * math.sqrt(2.0 / fan_out)
    conv_b = jnp.zeros((C_out,), jnp.float32)

    # bn_init(bn, 1): gamma = 1, beta = 0; non-trivial eval-mode running stats so the
    # BN folding path is actually exercised.
    bn_gamma = jnp.ones((C_out,), jnp.float32)
    bn_beta = jnp.zeros((C_out,), jnp.float32)
    bn_mean = 0.1 * jax.random.normal(k_m, (C_out,), jnp.float32)
    bn_var = 1.0 + 0.1 * jax.random.uniform(k_v, (C_out,), jnp.float32)

    ref1 = _reference(x, conv_w, conv_b, bn_gamma, bn_beta, bn_mean, bn_var, stride=1)

    # 1) stride=1, im2col (small C_in) path, f32 compute; t_tile=5 -> 4 tiles and
    #    T_pad_out > T_out, exercising the T/V/C padding + resident-input tiling.
    out1 = unit_tcn_forward(x, conv_w, conv_b, bn_gamma, bn_beta, bn_mean, bn_var,
                            stride=1, t_tile=5, compute_dtype=jnp.float32)
    out1 = jax.block_until_ready(out1)
    assert out1.shape == ref1.shape == (N, C_out, T, V), (out1.shape, ref1.shape)
    err1 = float(jnp.max(jnp.abs(out1 - ref1)))
    assert err1 < 1e-4, err1

    # 2) stride=1, accumulate path (the one used when C_in >= MXU depth), f32 compute.
    out2 = unit_tcn_forward(x, conv_w, conv_b, bn_gamma, bn_beta, bn_mean, bn_var,
                            stride=1, t_tile=8, compute_dtype=jnp.float32,
                            use_im2col=False)
    out2 = jax.block_until_ready(out2)
    err2 = float(jnp.max(jnp.abs(out2 - ref1)))
    assert err2 < 1e-4, err2

    # 3) stride=2, grouped-phase path, f32 compute.
    ref3 = _reference(x, conv_w, conv_b, bn_gamma, bn_beta, bn_mean, bn_var, stride=2)
    out3 = unit_tcn_forward(x, conv_w, conv_b, bn_gamma, bn_beta, bn_mean, bn_var,
                            stride=2, t_tile=4, compute_dtype=jnp.float32)
    out3 = jax.block_until_ready(out3)
    assert out3.shape == ref3.shape, (out3.shape, ref3.shape)
    err3 = float(jnp.max(jnp.abs(out3 - ref3)))
    assert err3 < 1e-4, err3

    # 4) default production setting (bf16 MXU operands, f32 accumulation): loose check.
    out4 = unit_tcn_forward(x, conv_w, conv_b, bn_gamma, bn_beta, bn_mean, bn_var,
                            stride=1)
    out4 = jax.block_until_ready(out4)
    err4 = float(jnp.max(jnp.abs(out4 - ref1)))
    assert err4 < 0.1, err4

    print("KERNEL_OK")
</pallas_src>

<mosaic_0001>
module attributes {stable_mosaic.version = 11 : i64} {
  func.func @_tcn_kernel_s1(%arg0: i32, %arg1: i32, %arg2: memref<1x896x128xf32, #tpu.memory_space<vmem>>, %arg3: memref<1152x128xf32, #tpu.memory_space<vmem>>, %arg4: memref<1x128xf32, #tpu.memory_space<vmem>>, %arg5: memref<1x160x128xf32, #tpu.memory_space<vmem>>) attributes {dimension_semantics = [#tpu.dimension_semantics<parallel>, #tpu.dimension_semantics<parallel>], iteration_bounds = array<i64: 2, 4>, scalar_prefetch = 0 : i64, scratch_operands = 0 : i64, tpu.core_type = #tpu.core_type<tc>, window_params = [{transform_indices = @transform_0, window_bounds = array<i64: 1, 896, 128>}, {pipeline_mode = #tpu.pipeline_mode<synchronous>, transform_indices = @transform_1, window_bounds = array<i64: 1152, 128>}, {pipeline_mode = #tpu.pipeline_mode<synchronous>, transform_indices = @transform_2, window_bounds = array<i64: 1, 128>}, {transform_indices = @transform_3, window_bounds = array<i64: 1, 160, 128>}]} {
    %c160_i32 = arith.constant 160 : i32
    %0 = arith.muli %arg1, %c160_i32 : i32
    %c0_i32 = arith.constant 0 : i32
    %1 = arith.addi %0, %c0_i32 : i32
    %2 = tpu.assume_multiple %1, 8 : i32
    %c0 = arith.constant 0 : index
    %3 = arith.index_cast %2 : i32 to index
    %c0_0 = arith.constant 0 : index
    %4 = vector.load %arg2[%c0, %3, %c0_0] : memref<1x896x128xf32, #tpu.memory_space<vmem>>, vector<1x160x128xf32>
    %5 = vector.shape_cast %4 : vector<1x160x128xf32> to vector<160x128xf32>
    %c160_i32_1 = arith.constant 160 : i32
    %6 = arith.muli %arg1, %c160_i32_1 : i32
    %c32_i32 = arith.constant 32 : i32
    %7 = arith.addi %6, %c32_i32 : i32
    %8 = tpu.assume_multiple %7, 8 : i32
    %c0_2 = arith.constant 0 : index
    %9 = arith.index_cast %8 : i32 to index
    %c0_3 = arith.constant 0 : index
    %10 = vector.load %arg2[%c0_2, %9, %c0_3] : memref<1x896x128xf32, #tpu.memory_space<vmem>>, vector<1x160x128xf32>
    %11 = vector.shape_cast %10 : vector<1x160x128xf32> to vector<160x128xf32>
    %c160_i32_4 = arith.constant 160 : i32
    %12 = arith.muli %arg1, %c160_i32_4 : i32
    %c64_i32 = arith.constant 64 : i32
    %13 = arith.addi %12, %c64_i32 : i32
    %14 = tpu.assume_multiple %13, 8 : i32
    %c0_5 = arith.constant 0 : index
    %15 = arith.index_cast %14 : i32 to index
    %c0_6 = arith.constant 0 : index
    %16 = vector.load %arg2[%c0_5, %15, %c0_6] : memref<1x896x128xf32, #tpu.memory_space<vmem>>, vector<1x160x128xf32>
    %17 = vector.shape_cast %16 : vector<1x160x128xf32> to vector<160x128xf32>
    %c160_i32_7 = arith.constant 160 : i32
    %18 = arith.muli %arg1, %c160_i32_7 : i32
    %c96_i32 = arith.constant 96 : i32
    %19 = arith.addi %18, %c96_i32 : i32
    %20 = tpu.assume_multiple %19, 8 : i32
    %c0_8 = arith.constant 0 : index
    %21 = arith.index_cast %20 : i32 to index
    %c0_9 = arith.constant 0 : index
    %22 = vector.load %arg2[%c0_8, %21, %c0_9] : memref<1x896x128xf32, #tpu.memory_space<vmem>>, vector<1x160x128xf32>
    %23 = vector.shape_cast %22 : vector<1x160x128xf32> to vector<160x128xf32>
    %c160_i32_10 = arith.constant 160 : i32
    %24 = arith.muli %arg1, %c160_i32_10 : i32
    %c128_i32 = arith.constant 128 : i32
    %25 = arith.addi %24, %c128_i32 : i32
    %26 = tpu.assume_multiple %25, 8 : i32
    %c0_11 = arith.constant 0 : index
    %27 = arith.index_cast %26 : i32 to index
    %c0_12 = arith.constant 0 : index
    %28 = vector.load %arg2[%c0_11, %27, %c0_12] : memref<1x896x128xf32, #tpu.memory_space<vmem>>, vector<1x160x128xf32>
    %29 = vector.shape_cast %28 : vector<1x160x128xf32> to vector<160x128xf32>
    %c160_i32_13 = arith.constant 160 : i32
    %30 = arith.muli %arg1, %c160_i32_13 : i32
    %c160_i32_14 = arith.constant 160 : i32
    %31 = arith.addi %30, %c160_i32_14 : i32
    %32 = tpu.assume_multiple %31, 8 : i32
    %c0_15 = arith.constant 0 : index
    %33 = arith.index_cast %32 : i32 to index
    %c0_16 = arith.constant 0 : index
    %34 = vector.load %arg2[%c0_15, %33, %c0_16] : memref<1x896x128xf32, #tpu.memory_space<vmem>>, vector<1x160x128xf32>
    %35 = vector.shape_cast %34 : vector<1x160x128xf32> to vector<160x128xf32>
    %c160_i32_17 = arith.constant 160 : i32
    %36 = arith.muli %arg1, %c160_i32_17 : i32
    %c192_i32 = arith.constant 192 : i32
    %37 = arith.addi %36, %c192_i32 : i32
    %38 = tpu.assume_multiple %37, 8 : i32
    %c0_18 = arith.constant 0 : index
    %39 = arith.index_cast %38 : i32 to index
    %c0_19 = arith.constant 0 : index
    %40 = vector.load %arg2[%c0_18, %39, %c0_19] : memref<1x896x128xf32, #tpu.memory_space<vmem>>, vector<1x160x128xf32>
    %41 = vector.shape_cast %40 : vector<1x160x128xf32> to vector<160x128xf32>
    %c160_i32_20 = arith.constant 160 : i32
    %42 = arith.muli %arg1, %c160_i32_20 : i32
    %c224_i32 = arith.constant 224 : i32
    %43 = arith.addi %42, %c224_i32 : i32
    %44 = tpu.assume_multiple %43, 8 : i32
    %c0_21 = arith.constant 0 : index
    %45 = arith.index_cast %44 : i32 to index
    %c0_22 = arith.constant 0 : index
    %46 = vector.load %arg2[%c0_21, %45, %c0_22] : memref<1x896x128xf32, #tpu.memory_space<vmem>>, vector<1x160x128xf32>
    %47 = vector.shape_cast %46 : vector<1x160x128xf32> to vector<160x128xf32>
    %c160_i32_23 = arith.constant 160 : i32
    %48 = arith.muli %arg1, %c160_i32_23 : i32
    %c256_i32 = arith.constant 256 : i32
    %49 = arith.addi %48, %c256_i32 : i32
    %50 = tpu.assume_multiple %49, 8 : i32
    %c0_24 = arith.constant 0 : index
    %51 = arith.index_cast %50 : i32 to index
    %c0_25 = arith.constant 0 : index
    %52 = vector.load %arg2[%c0_24, %51, %c0_25] : memref<1x896x128xf32, #tpu.memory_space<vmem>>, vector<1x160x128xf32>
    %53 = vector.shape_cast %52 : vector<1x160x128xf32> to vector<160x128xf32>
    %54 = tpu.concatenate %5, %11, %17, %23, %29, %35, %41, %47, %53 in 1 : vector<160x128xf32>, vector<160x128xf32>, vector<160x128xf32>, vector<160x128xf32>, vector<160x128xf32>, vector<160x128xf32>, vector<160x128xf32>, vector<160x128xf32>, vector<160x128xf32> -> vector<160x1152xf32>
    %c0_26 = arith.constant 0 : index
    %c0_27 = arith.constant 0 : index
    %55 = vector.load %arg3[%c0_26, %c0_27] : memref<1152x128xf32, #tpu.memory_space<vmem>>, vector<1152x128xf32>
    %cst = arith.constant dense<0.000000e+00> : vector<160x128xf32>
    %56 = tpu.matmul %54, %55, %cst {dimension_numbers = #tpu.dot_dimension_numbers<[1], [0], [0], [1], [0, 0, 1, 1], [], []>} : vector<160x1152xf32>, vector<1152x128xf32>, vector<160x128xf32> -> vector<160x128xf32>
    %c0_28 = arith.constant 0 : index
    %c0_29 = arith.constant 0 : index
    %57 = vector.load %arg4[%c0_28, %c0_29] : memref<1x128xf32, #tpu.memory_space<vmem>>, vector<1x128xf32>
    %58 = vector.broadcast %57 : vector<1x128xf32> to vector<160x128xf32>
    %59 = arith.addf %56, %58 : vector<160x128xf32>
    %c0_30 = arith.constant 0 : index
    %c0_31 = arith.constant 0 : index
    %c0_32 = arith.constant 0 : index
    %60 = vector.load %arg5[%c0_30, %c0_31, %c0_32] : memref<1x160x128xf32, #tpu.memory_space<vmem>>, vector<1x160x128xf32>
    %61 = vector.shape_cast %60 : vector<1x160x128xf32> to vector<160x128xf32>
    %62 = vector.shape_cast %59 : vector<160x128xf32> to vector<1x160x128xf32>
    tpu.vector_store %arg5[%c0_30, %c0_31, %c0_32], %62 {strides = array<i32>} : memref<1x160x128xf32, #tpu.memory_space<vmem>>, vector<1x160x128xf32>,
    return
  }
  func.func @transform_0(%arg0: i32, %arg1: i32) -> (i32, i32, i32) {
    %c0_i32 = arith.constant 0 : i32
    %c0_i32_0 = arith.constant 0 : i32
    %c0_i32_1 = arith.constant 0 : i32
    return %arg0, %c0_i32, %c0_i32_0 : i32, i32, i32
  }
  func.func @transform_1(%arg0: i32, %arg1: i32) -> (i32, i32) {
    %c0_i32 = arith.constant 0 : i32
    %c0_i32_0 = arith.constant 0 : i32
    %c0_i32_1 = arith.constant 0 : i32
    return %c0_i32, %c0_i32_0 : i32, i32
  }
  func.func @transform_2(%arg0: i32, %arg1: i32) -> (i32, i32) {
    %c0_i32 = arith.constant 0 : i32
    %c0_i32_0 = arith.constant 0 : i32
    %c0_i32_1 = arith.constant 0 : i32
    return %c0_i32, %c0_i32_0 : i32, i32
  }
  func.func @transform_3(%arg0: i32, %arg1: i32) -> (i32, i32, i32) {
    %c0_i32 = arith.constant 0 : i32
    %c0_i32_0 = arith.constant 0 : i32
    return %arg0, %arg1, %c0_i32 : i32, i32, i32
  }
}

</mosaic_0001>

<bundles_post_ra>
// kernel: tpu_custom_call.1
= control target key start
LH: loop header
LB: loop body
LE: loop exit
PB: predicated region body
PF: predicated region fallthrough
CT: control target
= control target key end

     0   :  { %s2997_s0 = inlined_call_operand.hbm [shape: f32[2,896,128], index: 0, kind: input, shape index: {}]   ;;  %s2998_s1 = inlined_call_operand.hbm [shape: f32[1152,128], index: 1, kind: input, shape index: {}]   ;;  %s2999_s2 = inlined_call_operand.vmem [shape: f32[1,128], index: 2, kind: input, shape index: {}]   ;;  %s3000_s3 = inlined_call_operand.hbm [shape: f32[2,640,128], index: 3, kind: output, shape index: {}]  }
   0x1   :  { %3010 = sst [smem:[#allocation16_spill]] %s2998_s1 }
   0x2   :  { %3011 = sst [smem:[#allocation17_spill]] %s3000_s3 }
   0x3   :  { %8 = vsyncpa [#allocation3], 0 }
   0x4   :  { %10 = vsyncpa [#allocation3 + $0x1], 0 }
   0x5   :  { %11 = vsyncpa [#allocation6], 0 }
   0x6   :  { %12 = vsyncpa [#allocation4], 0 }
   0x7   :  { %14 = vsyncpa [#allocation4 + $0x1], 0  ;;  %s2185_s12 = smov 0   ;;  %s2187_s13 = smov 0  }
   0x8   :  { %s2189_s14 = smov 0   ;;  %s2191_s15 = smov 0  }
   0x9   :  { %s2193_s16 = smov 0   ;;  %s2195_s17 = smov 0  }
   0xa   :  { %s2197_s18 = smov 0   ;;  %s2199_s19 = smov 0  }
   0xb   :  { %s2201_s20 = smov 0   ;;  %s2203_s21 = smov 0  }
   0xc   :  { %s2205_s22 = smov 0  }
   0xd LB: > { %3012 = sst [smem:[#allocation11_spill]] %s2115_s12  ;;  %s1552_s23 = sadd.s32 4294967295, %s2155_s22   ;;  %s2155_s22 = sphi %s2205_s22, %s20_s22   ;;  %s2151_s21 = sphi %s2203_s21, %s3043_s21   ;;  %s2147_s20 = sphi %s2201_s20, %s3034_s20   ;;  %s2143_s19 = sphi %s2199_s19, %s3042_s19   ;;  %s2139_s18 = sphi %s2197_s18, %s3033_s18   ;;  %s2135_s17 = sphi %s2195_s17, %s3041_s17   ;;  %s2131_s16 = sphi %s2193_s16, %s3040_s16   ;;  %s2127_s15 = sphi %s2191_s15, %s3039_s15   ;;  %s2123_s14 = sphi %s2189_s14, %s3038_s14   ;;  %s2119_s13 = sphi %s2187_s13, %s3037_s13   ;;  %s2115_s12 = sphi %s2185_s12, %s3036_s12  }
   0xe   : > { %3013 = sst [smem:[#allocation12_spill]] %s2147_s20  ;;  %s1553_s24 = sadd.s32 4294967294, %s2155_s22  }
   0xf   : > { %p52_p0 = scmp.ne.s32.totalorder %s2131_s16, %s2127_s15  ;;  %p2241_p1 = scmp.eq.s32.totalorder %s1552_s23, 0 }
  0x10   : > { %s109_s26 = sadd.s32 1, %s2123_s14  ;;  %p119_p2 = scmp.ne.s32.totalorder %s2123_s14, %s2119_s13 }
  0x11   : > { %p2250_p3 = por %p2241_p1, %p52_p0  ;;  %p120_p4 = scmp.eq.s32.totalorder %s1552_s23, 7 }
  0x12   : > { %p125_p5 = scmp.ne.s32.totalorder %s2119_s13, %s2115_s12  ;;  %p126_p6 = scmp.eq.s32.totalorder %s1553_s24, 7 }
  0x13   : > { %p2256_p7 = por %p120_p4, %p119_p2  ;;  %p1554_p8 = scmp.ge.s32.totalorder %s2155_s22, 1 }
  0x14   : > { %p2261_p9 = por %p126_p6, %p125_p5  ;;  %p133_p10 = scmp.lt.s32.totalorder %s2155_s22, 9 }
  0x15   : > { %s3016_s28 = scalar_select %p2256_p7, 1, 0 }
  0x16   : > { %s3017_s29 = scalar_select %p2261_p9, 1, 0 }
  0x17   : > { %p2266_p11 = pnand %p1554_p8, %p133_p10  ;;  %s2157_s4 = smov [#allocation5]  }
  0x18   : > { %3018 = sst [smem:[#allocation13_spill]] %s3017_s29  ;;  %s145_s5 = sshll.u32 %s2157_s4, 4  ;;  %s146_s5 = int_to_ptr.vmem [resolvable:$true] %s145_s5 }
  0x19   : > { %p1867_p12 = pneg %p2266_p11  ;;  %s1988_s6 = scalar_lea.vmem %s146_s5, 18432 }
  0x1a   : > { %p1989_p2 = scmp.ne.s32.totalorder %s146_s5, %s1988_s6  ;;  %p1996_p6 = scmp.lt.s32.totalorder %s146_s5, %s146_s5 }
  0x1b   : > { %p1868_p13 = pnand %p1867_p12, %p2241_p1  ;;  %p1997_p9 = scmp.lt.s32.totalorder %s1988_s6, %s1988_s6 }
  0x1d   : > { %p1979_p0 = pneg %p1868_p13  ;;  %p1998_p7 = por %p1997_p9, %p1996_p6 }
  0x1f   : > { %p1991_p4 = pnand %p1989_p2, %p1979_p0 }
  0x21   : > { %p1992_p5 = pneg %p1991_p4 }
  0x23   : > { %p1999_p8 = pnand %p1998_p7, %p1992_p5 }
  0x25   : > { %2002 = shalt.err (!%p1999_p8)
}
  0x26   : > { %s3002_s7 = smov 128   ;;  %s3003_s8 = smov 8  }
  0x27   : > { %s3020_s1 = sld [smem:[#allocation16_spill]]  ;;  %s29_s11 = sadd.s32 1, %s2147_s20 }
  0x28   : > { %p30_p7 = scmp.ge.s32.totalorder %s29_s11, 4  ;;  %s32_s15 = sadd.s32 1, %s2151_s21 }
  0x29   : > { %s39_s23 = sadd.s32 1, %s2135_s17  ;;  %p46_p9 = scmp.ne.s32.totalorder %s2135_s17, %s2131_s16 }
  0x2a   : > { %s3045_s11 = smov (%p30_p7, %s29_s11), 0  ;;  %s3047_s15 = smov (!%p30_p7, %s32_s15), %s2151_s21 }
  0x2b   : > { %3021 = sst [smem:[#allocation14_spill]] %s3045_s11  ;;  %p47_p10 = scmp.eq.s32.totalorder %s2155_s22, 0 }
  0x2c   : > { %s105_s24 = ssub.s32 %s2147_s20, %s3045_s11  ;;  %p34_p12 = scmp.ge.s32.totalorder %s3047_s15, 2 }
  0x2d   : > { %1870 = dma.hbm_to_vmem [thread:$0]  (!%p1868_p13), %s3020_s1, 18432, %s146_s5, [#allocation6], %s3002_s7, %s3002_s7, %s3003_s8  }
  0x2e   : > { %p1880_p0 = scmp.lt.s32.totalorder %s2155_s22, 8  ;;  %p2292_p13 = por %p47_p10, %p46_p9 }
  0x2f   : > { %s162_s5 = sand.u32 1, %s2135_s17   ;;  %s3049_s15 = smov (%p34_p12, %s3047_s15), 0 }
  0x30   : > { %3023 = sst [smem:[#allocation15_spill]] %s3049_s15  ;;  %s1854_s6 = smul.u32 896, %s162_s5 }
  0x31   : > { %s36_s9 = ssub.s32 %s2151_s21, %s3049_s15  ;;  %s1855_s10 = smul.u32 14336, %s2151_s21 }
  0x32   : > { %p37_p2 = scmp.eq.s32.totalorder %s36_s9, 0  ;;  %s106_s7 = sor.u32 %s105_s24, %s36_s9 }
  0x33   : > { %p107_p4 = scmp.eq.s32.totalorder %s106_s7, 0  ;;  %s172_s29 = scalar_lea.hbm %s2997_s0, %s1855_s10 }
  0x34   : > { %s2303_s8 = scalar_select %p37_p2, %s2135_s17, %s39_s23  }
  0x35   : > { %s2308_s1 = scalar_select %p107_p4, %s2123_s14, %s109_s26  }
  0x36   : > { %s166_s12 = scalar_lea.vmem [#allocation2], %s1854_s6  ;;  %p2317_p5 = pnand %p1880_p0, %p2292_p13 }
  0x37   : > { %s173_s3 = sshll.u32 %s166_s12, 4  ;;  %s163_s7 = scalar_lea.sflag [#allocation3], %s162_s5  ;;  %s174_s3 = int_to_ptr.vmem [resolvable:$true] %s173_s3 }
  0x38   : > { %p2005_p6 = pneg %p2317_p5  ;;  %s2016_s23 = scalar_lea.vmem %s174_s3, 14336 }
  0x39   : > { %p2017_p8 = scmp.ne.s32.totalorder %s174_s3, %s2016_s23  ;;  %s2160_s26 = smov [#allocation2]  }
  0x3a   : > { %s2021_s20 = sshll.u32 %s2160_s26, 4  ;;  %s2022_s20 = int_to_ptr.vmem [resolvable:$false] %s2021_s20 }
  0x3b   : > { %p2019_p7 = pnand %p2017_p8, %p2005_p6  ;;  %s2023_s11 = scalar_lea.vmem %s2022_s20, 28672 }
  0x3c   : > { %p2024_p10 = scmp.lt.s32.totalorder %s174_s3, %s2022_s20  ;;  %p2025_p12 = scmp.lt.s32.totalorder %s2023_s11, %s2016_s23 }
  0x3d   : > { %p2020_p9 = pneg %p2019_p7 }
  0x3e   : > { %p2026_p2 = por %p2025_p12, %p2024_p10 }
  0x40   : > { %p2027_p4 = pnand %p2026_p2, %p2020_p9 }
  0x42   : > { %2030 = shalt.err (!%p2027_p4)
}
  0x43   : > { %s3025_s12 = smov 8   ;;  %s3026_s24 = smov 128  }
  0x44   : > { %1874 = dma.hbm_to_vmem [thread:$0]  (!%p2317_p5), %s172_s29, 14336, %s174_s3, %s163_s7, %s3026_s24, %s3026_s24, %s3025_s12  }
  0x45   : > { %185 = sbr.rel (%p2266_p11) target bundleno = 554 (0x22a), region = 32  ;;  %s187_s4 = sand.u32 (!%p2266_p11), 1, %s2131_s16  }
  0x46   : > { %s2331_s5 = smul.u32 (!%p2266_p11), 896, %s187_s4  ;;  %s188_s6 = scalar_lea.sflag (!%p2266_p11), [#allocation3], %s187_s4 }
  0x48   : > { %s191_s9 = scalar_lea.vmem (!%p2266_p11), [#allocation2], %s2331_s5 }
  0x4a   : > { %2102 = dma.done.wait (%p2250_p3), %s188_s6, 14336  }
  0x4b   : > { %2104 = vsyncadd (%p2250_p3), %s188_s6, 4294952960 }
  0x4c   : > { %2106 = dma.done.wait (%p2241_p1), [#allocation6], 18432  }
  0x4d   : > { %2108 = vsyncadd (%p2241_p1), [#allocation6], 4294948864  ;;  %v2161_v0 = vmov 0.0   ;;  %v432_v1 = vld [vmem:[#allocation5 + $0x78] sm:$0xff]  ;;  %v431_v3 = vld [vmem:[#allocation5 + $0x70] sm:$0xff]  ;;  %s219_s3 = smul.u32 160, %s2139_s18 }
  0x4e   : > { %568 = vmatprep.subr.mxu0 %v2161_v0  ;;  %733 = vmatprep.subr.mxu1 %v2161_v0  ;;  %v464_v2 = vld [vmem:[#allocation5 + $0x178] sm:$0xff]  ;;  %v463_v4 = vld [vmem:[#allocation5 + $0x170] sm:$0xff]  ;;  %v430_v5 = vld [vmem:[#allocation5 + $0x68] sm:$0xff]  ;;  %s215_s30 = sand.u32 1, %s2119_s13   ;;  %s1421_s7 = smul.u32 20, %s2139_s18 }
  0x4f   : > { %569 = vmatpush1.msra.mxu0 %v432_v1  ;;  %734 = vmatpush1.msra.mxu1 %v464_v2  ;;  %v462_v6 = vld [vmem:[#allocation5 + $0x168] sm:$0xff]  ;;  %v429_v7 = vld [vmem:[#allocation5 + $0x60] sm:$0xff]  ;;  %v428_v9 = vld [vmem:[#allocation5 + $0x58] sm:$0xff]  ;;  %s2403_s25 = scalar_lea.vmem %s191_s9, %s219_s3 [#allocation2]  ;;  %s1857_s15 = smul.u32 160, %s215_s30 }
  0x50   : > { %570 = vmatprep.subr.mxu0 %v2161_v0  ;;  %735 = vmatprep.subr.mxu1 %v2161_v0  ;;  %v461_v8 = vld [vmem:[#allocation5 + $0x160] sm:$0xff]  ;;  %v460_v10 = vld [vmem:[#allocation5 + $0x158] sm:$0xff]  ;;  %v427_v11 = vld [vmem:[#allocation5 + $0x50] sm:$0xff]  ;;  %s1858_s23 = smul.u32 80, %s2143_s19  ;;  %s3027_s12 = sld [smem:[#allocation17_spill]] }
  0x51   : > { %571 = vmatpush1.msra.mxu0 %v431_v3  ;;  %736 = vmatpush1.msra.mxu1 %v463_v4  ;;  %v459_v12 = vld [vmem:[#allocation5 + $0x150] sm:$0xff]  ;;  %v426_v13 = vld [vmem:[#allocation5 + $0x48] sm:$0xff]  ;;  %v425_v15 = vld [vmem:[#allocation5 + $0x40] sm:$0xff]  ;;  %s2879_s10 = scalar_lea.vmem [#allocation7], %s1857_s15  ;;  %s2937_s5 = scalar_lea.sflag [#allocation4], %s215_s30 }
  0x52   : > { %572 = vmatprep.subr.mxu0 %v2161_v0  ;;  %737 = vmatprep.subr.mxu1 %v2161_v0  ;;  %v458_v14 = vld [vmem:[#allocation5 + $0x148] sm:$0xff]  ;;  %v457_v16 = vld [vmem:[#allocation5 + $0x140] sm:$0xff]  ;;  %v424_v17 = vld [vmem:[#allocation5 + $0x38] sm:$0xff]  ;;  %s1426_s18 = sadd.s32 %s1858_s23, %s1421_s7  ;;  %s1429_s26 = sshll.u32 %s2879_s10, 4  ;;  %s2928_s26 = int_to_ptr.vmem [resolvable:$true] %s1429_s26 }
  0x53   : > { %573 = vmatpush1.msra.mxu0 %v430_v5  ;;  %738 = vmatpush1.msra.mxu1 %v462_v6  ;;  %v456_v18 = vld [vmem:[#allocation5 + $0x138] sm:$0xff]  ;;  %v423_v19 = vld [vmem:[#allocation5 + $0x30] sm:$0xff]  ;;  %v422_v21 = vld [vmem:[#allocation5 + $0x28] sm:$0xff]  ;;  %s1721_s19 = sshll.u32 %s1426_s18, 7  ;;  %s2031_s6 = scalar_lea.vmem %s2928_s26, 2560 }
  0x54   : > { %574 = vmatprep.subr.mxu0 %v2161_v0  ;;  %739 = vmatprep.subr.mxu1 %v2161_v0  ;;  %v455_v20 = vld [vmem:[#allocation5 + $0x130] sm:$0xff]  ;;  %v454_v22 = vld [vmem:[#allocation5 + $0x128] sm:$0xff]  ;;  %v421_v23 = vld [vmem:[#allocation5 + $0x20] sm:$0xff]  ;;  %p2032_p1 = scmp.ne.s32.totalorder %s2928_s26, %s2031_s6  ;;  %p3029_p3 = scmp.ne.s32.totalorder %s3016_s28, 0 }
  0x55   : > { %575 = vmatpush1.msra.mxu0 %v429_v7  ;;  %740 = vmatpush1.msra.mxu1 %v461_v8  ;;  %v453_v24 = vld [vmem:[#allocation5 + $0x120] sm:$0xff]  ;;  %v420_v25 = vld [vmem:[#allocation5 + $0x18] sm:$0xff]  ;;  %v419_v27 = vld [vmem:[#allocation5 + $0x10] sm:$0xff]  ;;  %s2162_s9 = smov [#allocation7]  }
  0x56   : > { %576 = vmatprep.subr.mxu0 %v2161_v0  ;;  %741 = vmatprep.subr.mxu1 %v2161_v0  ;;  %v452_v26 = vld [vmem:[#allocation5 + $0x118] sm:$0xff]  ;;  %v451_v28 = vld [vmem:[#allocation5 + $0x110] sm:$0xff]  ;;  %v418_v29 = vld [vmem:[#allocation5 + $0x8] sm:$0xff]  ;;  %s3028_s24 = smov %s3027_s12  ;;  %s2926_s4 = scalar_lea.hbm %s3027_s12, %s1721_s19 }
  0x57   : > { %577 = vmatpush1.msra.mxu0 %v428_v9  ;;  %742 = vmatpush1.msra.mxu1 %v460_v10  ;;  %v450_v30 = vld [vmem:[#allocation5 + $0x108] sm:$0xff]  ;;  %v417_v31 = vld [vmem:[#allocation5] sm:$0xff]  ;;  %v448_v33 = vld [vmem:[#allocation5 + $0xf8] sm:$0xff]  ;;  %p2033_p11 = pnand %p2032_p1, %p3029_p3  ;;  %s2035_s3 = sshll.u32 %s2162_s9, 4  ;;  %s2036_s3 = int_to_ptr.vmem [resolvable:$false] %s2035_s3 }
  0x58   : > { %578 = vmatprep.subr.mxu0 %v2161_v0  ;;  %743 = vmatprep.subr.mxu1 %v2161_v0  ;;  %v449_v32 = vld [vmem:[#allocation5 + $0x100] sm:$0xff]  ;;  %v480_v34 = vld [vmem:[#allocation5 + $0x1f8] sm:$0xff]  ;;  %v447_v35 = vld [vmem:[#allocation5 + $0xf0] sm:$0xff]  ;;  %p2038_p13 = scmp.lt.s32.totalorder %s2928_s26, %s2036_s3 }
  0x59   : > { %579 = vmatpush1.msra.mxu0 %v427_v11  ;;  %744 = vmatpush1.msra.mxu1 %v459_v12  ;;  %v479_v36 = vld [vmem:[#allocation5 + $0x1f0] sm:$0xff]  ;;  %v446_v37 = vld [vmem:[#allocation5 + $0xe8] sm:$0xff]  ;;  %v445_v39 = vld [vmem:[#allocation5 + $0xe0] sm:$0xff]  ;;  %p2034_p0 = pneg %p2033_p11 }
  0x5a   : > { %580 = vmatprep.subr.mxu0 %v2161_v0  ;;  %745 = vmatprep.subr.mxu1 %v2161_v0  ;;  %v478_v38 = vld [vmem:[#allocation5 + $0x1e8] sm:$0xff]  ;;  %v477_v40 = vld [vmem:[#allocation5 + $0x1e0] sm:$0xff]  ;;  %v444_v41 = vld [vmem:[#allocation5 + $0xd8] sm:$0xff] }
  0x5b   : > { %581 = vmatpush1.msra.mxu0 %v426_v13  ;;  %746 = vmatpush1.msra.mxu1 %v458_v14  ;;  %v476_v42 = vld [vmem:[#allocation5 + $0x1d8] sm:$0xff]  ;;  %v443_v43 = vld [vmem:[#allocation5 + $0xd0] sm:$0xff]  ;;  %v442_v45 = vld [vmem:[#allocation5 + $0xc8] sm:$0xff] }
  0x5c   : > { %582 = vmatprep.subr.mxu0 %v2161_v0  ;;  %747 = vmatprep.subr.mxu1 %v2161_v0  ;;  %v475_v44 = vld [vmem:[#allocation5 + $0x1d0] sm:$0xff]  ;;  %v474_v46 = vld [vmem:[#allocation5 + $0x1c8] sm:$0xff]  ;;  %v441_v47 = vld [vmem:[#allocation5 + $0xc0] sm:$0xff] }
  0x5d   : > { %583 = vmatpush1.msra.mxu0 %v425_v15  ;;  %748 = vmatpush1.msra.mxu1 %v457_v16  ;;  %v473_v48 = vld [vmem:[#allocation5 + $0x1c0] sm:$0xff]  ;;  %v440_v49 = vld [vmem:[#allocation5 + $0xb8] sm:$0xff]  ;;  %v439_v51 = vld [vmem:[#allocation5 + $0xb0] sm:$0xff] }
  0x5e   : > { %584 = vmatprep.subr.mxu0 %v2161_v0  ;;  %749 = vmatprep.subr.mxu1 %v2161_v0  ;;  %v472_v50 = vld [vmem:[#allocation5 + $0x1b8] sm:$0xff]  ;;  %v471_v52 = vld [vmem:[#allocation5 + $0x1b0] sm:$0xff]  ;;  %v438_v53 = vld [vmem:[#allocation5 + $0xa8] sm:$0xff] }
  0x5f   : > { %585 = vmatpush1.msra.mxu0 %v424_v17  ;;  %750 = vmatpush1.msra.mxu1 %v456_v18  ;;  %v470_v54 = vld [vmem:[#allocation5 + $0x1a8] sm:$0xff]  ;;  %v437_v55 = vld [vmem:[#allocation5 + $0xa0] sm:$0xff]  ;;  %v436_v57 = vld [vmem:[#allocation5 + $0x98] sm:$0xff] }
  0x60   : > { %586 = vmatprep.subr.mxu0 %v2161_v0  ;;  %751 = vmatprep.subr.mxu1 %v2161_v0  ;;  %v469_v56 = vld [vmem:[#allocation5 + $0x1a0] sm:$0xff]  ;;  %v468_v58 = vld [vmem:[#allocation5 + $0x198] sm:$0xff]  ;;  %v435_v59 = vld [vmem:[#allocation5 + $0x90] sm:$0xff] }
  0x61   : > { %587 = vmatpush1.msra.mxu0 %v423_v19  ;;  %752 = vmatpush1.msra.mxu1 %v455_v20  ;;  %v467_v60 = vld [vmem:[#allocation5 + $0x190] sm:$0xff]  ;;  %v434_v61 = vld [vmem:[#allocation5 + $0x88] sm:$0xff]  ;;  %v433_v63 = vld [vmem:[#allocation5 + $0x80] sm:$0xff] }
  0x62   : > { %588 = vmatprep.subr.mxu0 %v2161_v0  ;;  %753 = vmatprep.subr.mxu1 %v2161_v0  ;;  %v466_v62 = vld [vmem:[#allocation5 + $0x188] sm:$0xff]  ;;  %v2410_v1 = vld [vmem:[%s2403_s25 + $0x20] sm:$0xff]  ;;  %v496_v6 = vld [vmem:[#allocation5 + $0x278] sm:$0xff] }
  0x63   : > { %589 = vmatpush1.msra.mxu0 %v422_v21  ;;  %754 = vmatpush1.msra.mxu1 %v454_v22  ;;  %v465_v2 = vld [vmem:[#allocation5 + $0x180] sm:$0xff]  ;;  %v528_v7 = vld [vmem:[#allocation5 + $0x378] sm:$0xff]  ;;  %v2425_v8 = vld [vmem:[%s2403_s25 + $0x28] sm:$0xff] }
  0x64   : > { %590 = vmatprep.subr.mxu0 %v2161_v0  ;;  %755 = vmatprep.subr.mxu1 %v2161_v0  ;;  %v2413_v3 = vld [vmem:[%s2403_s25 + $0x60] sm:$0xff]  ;;  %v2428_v9 = vld [vmem:[%s2403_s25 + $0x68] sm:$0xff]  ;;  %v495_v12 = vld [vmem:[#allocation5 + $0x270] sm:$0xff] }
  0x65   : > { %591 = vmatpush1.msra.mxu0 %v421_v23  ;;  %756 = vmatpush1.msra.mxu1 %v453_v24  ;;  %v221_v4 = vld [vmem:[%s2403_s25] sm:$0xff]  ;;  %v222_v10 = vld [vmem:[%s2403_s25 + $0x8] sm:$0xff]  ;;  %v527_v13 = vld [vmem:[#allocation5 + $0x370] sm:$0xff] }
  0x66   : > { %592 = vmatprep.subr.mxu0 %v2161_v0  ;;  %757 = vmatprep.subr.mxu1 %v2161_v0  ;;  %v2419_v5 = vld [vmem:[%s2403_s25 + $0x40] sm:$0xff]  ;;  %v2434_v11 = vld [vmem:[%s2403_s25 + $0x48] sm:$0xff]  ;;  %v2442_v16 = vld [vmem:[%s2403_s25 + $0x30] sm:$0xff] }
  0x67   : > { %593 = vmatpush1.msra.mxu0 %v420_v25  ;;  %758 = vmatpush1.msra.mxu1 %v452_v26  ;;  %v494_v14 = vld [vmem:[#allocation5 + $0x268] sm:$0xff]  ;;  %v2445_v17 = vld [vmem:[%s2403_s25 + $0x70] sm:$0xff]  ;;  %v493_v20 = vld [vmem:[#allocation5 + $0x260] sm:$0xff] }
  0x68   : > { %594 = vmatprep.subr.mxu0 %v2161_v0  ;;  %759 = vmatprep.subr.mxu1 %v2161_v0  ;;  %v526_v15 = vld [vmem:[#allocation5 + $0x368] sm:$0xff]  ;;  %v223_v18 = vld [vmem:[%s2403_s25 + $0x10] sm:$0xff]  ;;  %v525_v21 = vld [vmem:[#allocation5 + $0x360] sm:$0xff] }
  0x69   : > { %595 = vmatpush1.msra.mxu0 %v419_v27  ;;  %760 = vmatpush1.msra.mxu1 %v451_v28  ;;  %v2451_v19 = vld [vmem:[%s2403_s25 + $0x50] sm:$0xff]  ;;  %v2459_v22 = vld [vmem:[%s2403_s25 + $0x38] sm:$0xff] }
  0x6a   : > { %596 = vmatprep.subr.mxu0 %v2161_v0  ;;  %761 = vmatprep.subr.mxu1 %v2161_v0  ;;  %v2462_v23 = vld [vmem:[%s2403_s25 + $0x78] sm:$0xff]  ;;  %v491_v28 = vld [vmem:[#allocation5 + $0x250] sm:$0xff] }
  0x6b   : > { %597 = vmatpush1.msra.mxu0 %v418_v29  ;;  %762 = vmatpush1.msra.mxu1 %v450_v30  ;;  %v492_v24 = vld [vmem:[#allocation5 + $0x258] sm:$0xff]  ;;  %v523_v29 = vld [vmem:[#allocation5 + $0x350] sm:$0xff]  ;;  %v2474_v30 = vld [vmem:[%s2403_s25 + $0x80] sm:$0xff] }
  0x6c   : > { %598 = vmatprep.subr.mxu0 %v2161_v0  ;;  %763 = vmatprep.subr.mxu1 %v2161_v0  ;;  %v524_v25 = vld [vmem:[#allocation5 + $0x358] sm:$0xff] }
  0x6d   : > { %599 = vmatpush1.msra.mxu0 %v417_v31  ;;  %764 = vmatpush1.msra.mxu1 %v449_v32  ;;  %v224_v26 = vld [vmem:[%s2403_s25 + $0x18] sm:$0xff]  ;;  %v490_v31 = vld [vmem:[#allocation5 + $0x248] sm:$0xff] }
  0x6e   : > { %600 = vmatprep.subr.mxu0 %v2161_v0  ;;  %765 = vmatprep.subr.mxu1 %v2161_v0  ;;  %v2468_v27 = vld [vmem:[%s2403_s25 + $0x58] sm:$0xff]  ;;  %v522_v32 = vld [vmem:[#allocation5 + $0x348] sm:$0xff] }
  0x6f   : > { %601 = vmatpush2.msra.mxu0 %v448_v33  ;;  %766 = vmatpush2.msra.mxu1 %v480_v34  ;;  %v2485_v33 = vld [vmem:[%s2403_s25 + $0x88] sm:$0xff]  ;;  %v489_v34 = vld [vmem:[#allocation5 + $0x240] sm:$0xff] }
  0x70   : > { %602 = vmatprep.subr.mxu0 %v2161_v0  ;;  %767 = vmatprep.subr.mxu1 %v2161_v0 }
  0x71   : > { %603 = vmatpush2.msra.mxu0 %v447_v35  ;;  %768 = vmatpush2.msra.mxu1 %v479_v36  ;;  %v521_v35 = vld [vmem:[#allocation5 + $0x340] sm:$0xff]  ;;  %v488_v36 = vld [vmem:[#allocation5 + $0x238] sm:$0xff] }
  0x72   : > { %604 = vmatprep.subr.mxu0 %v2161_v0  ;;  %769 = vmatprep.subr.mxu1 %v2161_v0 }
  0x73   : > { %605 = vmatpush2.msra.mxu0 %v446_v37  ;;  %770 = vmatpush2.msra.mxu1 %v478_v38  ;;  %v520_v37 = vld [vmem:[#allocation5 + $0x338] sm:$0xff]  ;;  %v2494_v38 = vld [vmem:[%s2403_s25 + $0x90] sm:$0xff] }
  0x74   : > { %606 = vmatprep.subr.mxu0 %v2161_v0  ;;  %771 = vmatprep.subr.mxu1 %v2161_v0 }
  0x75   : > { %607 = vmatpush2.msra.mxu0 %v445_v39  ;;  %772 = vmatpush2.msra.mxu1 %v477_v40  ;;  %v487_v39 = vld [vmem:[#allocation5 + $0x230] sm:$0xff] }
  0x76   : > { %608 = vmatprep.subr.mxu0 %v2161_v0  ;;  %773 = vmatprep.subr.mxu1 %v2161_v0  ;;  %v519_v40 = vld [vmem:[#allocation5 + $0x330] sm:$0xff] }
  0x77   : > { %609 = vmatpush2.msra.mxu0 %v444_v41  ;;  %774 = vmatpush2.msra.mxu1 %v476_v42  ;;  %v486_v41 = vld [vmem:[#allocation5 + $0x228] sm:$0xff] }
  0x78   : > { %610 = vmatprep.subr.mxu0 %v2161_v0  ;;  %775 = vmatprep.subr.mxu1 %v2161_v0  ;;  %v518_v42 = vld [vmem:[#allocation5 + $0x328] sm:$0xff] }
  0x79   : > { %611 = vmatpush2.msra.mxu0 %v443_v43  ;;  %776 = vmatpush2.msra.mxu1 %v475_v44  ;;  %v2505_v43 = vld [vmem:[%s2403_s25 + $0x98] sm:$0xff]  ;;  %v485_v44 = vld [vmem:[#allocation5 + $0x220] sm:$0xff] }
  0x7a   : > { %612 = vmatprep.subr.mxu0 %v2161_v0  ;;  %777 = vmatprep.subr.mxu1 %v2161_v0 }
  0x7b   : > { %613 = vmatpush2.msra.mxu0 %v442_v45  ;;  %778 = vmatpush2.msra.mxu1 %v474_v46  ;;  %v517_v45 = vld [vmem:[#allocation5 + $0x320] sm:$0xff] }
  0x7c   : > { %614 = vmatprep.subr.mxu0 %v2161_v0  ;;  %779 = vmatprep.subr.mxu1 %v2161_v0  ;;  %v2516_v46 = vld [vmem:[%s2403_s25 + $0xa0] sm:$0xff] }
  0x7d   : > { %615 = vmatpush2.msra.mxu0 %v441_v47  ;;  %780 = vmatpush2.msra.mxu1 %v473_v48  ;;  %v484_v47 = vld [vmem:[#allocation5 + $0x218] sm:$0xff] }
  0x7e   : > { %616 = vmatprep.subr.mxu0 %v2161_v0  ;;  %781 = vmatprep.subr.mxu1 %v2161_v0  ;;  %v516_v48 = vld [vmem:[#allocation5 + $0x318] sm:$0xff] }
  0x7f   : > { %617 = vmatpush2.msra.mxu0 %v440_v49  ;;  %782 = vmatpush2.msra.mxu1 %v472_v50  ;;  %v483_v49 = vld [vmem:[#allocation5 + $0x210] sm:$0xff] }
  0x80   : > { %618 = vmatprep.subr.mxu0 %v2161_v0  ;;  %783 = vmatprep.subr.mxu1 %v2161_v0  ;;  %v515_v50 = vld [vmem:[#allocation5 + $0x310] sm:$0xff] }
  0x81   : > { %619 = vmatpush2.msra.mxu0 %v439_v51  ;;  %784 = vmatpush2.msra.mxu1 %v471_v52  ;;  %v2525_v51 = vld [vmem:[%s2403_s25 + $0xa8] sm:$0xff] }
  0x82   : > { %620 = vmatprep.subr.mxu0 %v2161_v0  ;;  %785 = vmatprep.subr.mxu1 %v2161_v0  ;;  %v482_v52 = vld [vmem:[#allocation5 + $0x208] sm:$0xff] }
  0x83   : > { %621 = vmatpush2.msra.mxu0 %v438_v53  ;;  %786 = vmatpush2.msra.mxu1 %v470_v54  ;;  %v514_v53 = vld [vmem:[#allocation5 + $0x308] sm:$0xff]  ;;  %v2536_v54 = vld [vmem:[%s2403_s25 + $0xb0] sm:$0xff] }
  0x84   : > { %622 = vmatprep.subr.mxu0 %v2161_v0  ;;  %787 = vmatprep.subr.mxu1 %v2161_v0 }
  0x85   : > { %623 = vmatpush2.msra.mxu0 %v437_v55  ;;  %788 = vmatpush2.msra.mxu1 %v469_v56  ;;  %v481_v55 = vld [vmem:[#allocation5 + $0x200] sm:$0xff] }
  0x86   : > { %624 = vmatprep.subr.mxu0 %v2161_v0  ;;  %789 = vmatprep.subr.mxu1 %v2161_v0  ;;  %v513_v56 = vld [vmem:[#allocation5 + $0x300] sm:$0xff] }
  0x87   : > { %625 = vmatpush2.msra.mxu0 %v436_v57  ;;  %790 = vmatpush2.msra.mxu1 %v468_v58  ;;  %v512_v57 = vld [vmem:[#allocation5 + $0x2f8] sm:$0xff] }
  0x88   : > { %626 = vmatprep.subr.mxu0 %v2161_v0  ;;  %791 = vmatprep.subr.mxu1 %v2161_v0  ;;  %v544_v58 = vld [vmem:[#allocation5 + $0x3f8] sm:$0xff] }
  0x89   : > { %627 = vmatpush2.msra.mxu0 %v435_v59  ;;  %792 = vmatpush2.msra.mxu1 %v467_v60  ;;  %v2545_v59 = vld [vmem:[%s2403_s25 + $0xb8] sm:$0xff]  ;;  %v511_v60 = vld [vmem:[#allocation5 + $0x2f0] sm:$0xff] }
  0x8a   : > { %628 = vmatprep.subr.mxu0 %v2161_v0  ;;  %793 = vmatprep.subr.mxu1 %v2161_v0 }
  0x8b   : > { %629 = vmatpush2.msra.mxu0 %v434_v61  ;;  %794 = vmatpush2.msra.mxu1 %v466_v62  ;;  %v543_v61 = vld [vmem:[#allocation5 + $0x3f0] sm:$0xff]  ;;  %v510_v62 = vld [vmem:[#allocation5 + $0x2e8] sm:$0xff] }
  0x8c   : > { %630 = vmatprep.subr.mxu0 %v2161_v0  ;;  %795 = vmatprep.subr.mxu1 %v2161_v0 }
  0x8d   : > { %631 = vmatpush2.msra.mxu0 %v433_v63  ;;  %632 = vmatprep.mubr.f32.mxu0 %v2410_v1  ;;  %v542_v63 = vld [vmem:[#allocation5 + $0x3e8] sm:$0xff] }
  0x8e   : > { %796 = vmatpush2.msra.mxu1 %v465_v2  ;;  %797 = vmatprep.mubr.f32.mxu1 %v2413_v3  ;;  %v509_v2 = vld [vmem:[#allocation5 + $0x2e0] sm:$0xff] }
  0x8f   : > { %633 = vmatmul.mubr.f32.vlgmr.msra.gmra.mxu0 %v221_v4  ;;  %798 = vmatmul.mubr.f32.vlgmr.msra.gmra.mxu1 %v2419_v5  ;;  %v541_v4 = vld [vmem:[#allocation5 + $0x3e0] sm:$0xff] }
  0x90   : > { %898 = vmatprep.subr.mxu0 %v2161_v0  ;;  %1063 = vmatprep.subr.mxu1 %v2161_v0 }
  0x91   : > { %899 = vmatpush1.msra.mxu0 %v496_v6  ;;  %1064 = vmatpush1.msra.mxu1 %v528_v7  ;;  %v508_v6 = vld [vmem:[#allocation5 + $0x2d8] sm:$0xff] }
  0x92   : > { %637 = vmatprep.mubr.f32.mxu0 %v2425_v8  ;;  %802 = vmatprep.mubr.f32.mxu1 %v2428_v9  ;;  %v540_v7 = vld [vmem:[#allocation5 + $0x3d8] sm:$0xff] }
  0x93   : > { %900 = vmatprep.subr.mxu0 %v2161_v0  ;;  %1065 = vmatprep.subr.mxu1 %v2161_v0 }
  0x94   : > { %638 = vmatmul.mubr.f32.gmra.mxu0 %v222_v10  ;;  %803 = vmatmul.mubr.f32.gmra.mxu1 %v2434_v11  ;;  %v2576_v10 = vld [vmem:[%s2403_s25 + $0xd0] sm:$0xff] }
  0x95   : > { %901 = vmatpush1.msra.mxu0 %v495_v12  ;;  %1066 = vmatpush1.msra.mxu1 %v527_v13  ;;  %v538_v12 = vld [vmem:[#allocation5 + $0x3c8] sm:$0xff]  ;;  %v505_v13 = vld [vmem:[#allocation5 + $0x2c0] sm:$0xff] }
  0x96   : > { %902 = vmatprep.subr.mxu0 %v2161_v0  ;;  %1067 = vmatprep.subr.mxu1 %v2161_v0 }
  0x97   : > { %903 = vmatpush1.msra.mxu0 %v494_v14  ;;  %1068 = vmatpush1.msra.mxu1 %v526_v15  ;;  %v537_v14 = vld [vmem:[#allocation5 + $0x3c0] sm:$0xff]  ;;  %v504_v15 = vld [vmem:[#allocation5 + $0x2b8] sm:$0xff] }
  0x98   : > { %642 = vmatprep.mubr.f32.mxu0 %v2442_v16  ;;  %807 = vmatprep.mubr.f32.mxu1 %v2445_v17 }
  0x99   : > { %643 = vmatmul.mubr.f32.gmra.mxu0 %v223_v18  ;;  %808 = vmatmul.mubr.f32.gmra.mxu1 %v2451_v19  ;;  %v503_v18 = vld [vmem:[#allocation5 + $0x2b0] sm:$0xff] }
  0x9a   : > { %904 = vmatprep.subr.mxu0 %v2161_v0  ;;  %1069 = vmatprep.subr.mxu1 %v2161_v0 }
  0x9b   : > { %905 = vmatpush1.msra.mxu0 %v493_v20  ;;  %1070 = vmatpush1.msra.mxu1 %v525_v21  ;;  %v502_v20 = vld [vmem:[#allocation5 + $0x2a8] sm:$0xff] }
  0x9c   : > { %906 = vmatprep.subr.mxu0 %v2161_v0  ;;  %1071 = vmatprep.subr.mxu1 %v2161_v0  ;;  %v534_v21 = vld [vmem:[#allocation5 + $0x3a8] sm:$0xff] }
  0x9d   : > { %647 = vmatprep.mubr.f32.mxu0 %v2459_v22  ;;  %812 = vmatprep.mubr.f32.mxu1 %v2462_v23 }
  0x9e   : > { %907 = vmatpush1.msra.mxu0 %v492_v24  ;;  %1072 = vmatpush1.msra.mxu1 %v524_v25  ;;  %v533_v24 = vld [vmem:[#allocation5 + $0x3a0] sm:$0xff]  ;;  %v2618_v25 = vld [vmem:[%s2403_s25 + $0xf0] sm:$0xff] }
  0x9f   : > { %648 = vmatmul.mubr.f32.gmra.mxu0 %v224_v26  ;;  %813 = vmatmul.mubr.f32.gmra.mxu1 %v2468_v27  ;;  %v500_v26 = vld [vmem:[#allocation5 + $0x298] sm:$0xff] }
  0xa0   : > { %908 = vmatprep.subr.mxu0 %v2161_v0  ;;  %1073 = vmatprep.subr.mxu1 %v2161_v0 }
  0xa1   : > { %909 = vmatpush1.msra.mxu0 %v491_v28  ;;  %1074 = vmatpush1.msra.mxu1 %v523_v29  ;;  %v499_v28 = vld [vmem:[#allocation5 + $0x290] sm:$0xff] }
  0xa2   : > { %652 = vmatprep.mubr.f32.mxu0 %v2419_v5  ;;  %817 = vmatprep.mubr.f32.mxu1 %v2474_v30  ;;  %v531_v29 = vld [vmem:[#allocation5 + $0x390] sm:$0xff] }
  0xa3   : > { %910 = vmatprep.subr.mxu0 %v2161_v0  ;;  %1075 = vmatprep.subr.mxu1 %v2161_v0 }
  0xa4   : > { %653 = vmatmul.mubr.f32.gmra.mxu0 %v2410_v1  ;;  %818 = vmatmul.mubr.f32.gmra.mxu1 %v2413_v3  ;;  %v2556_v1 = vld [vmem:[%s2403_s25 + $0xc0] sm:$0xff] }
  0xa5   : > { %911 = vmatpush1.msra.mxu0 %v490_v31  ;;  %1076 = vmatpush1.msra.mxu1 %v522_v32  ;;  %v2627_v31 = vld [vmem:[%s2403_s25 + $0xf8] sm:$0xff]  ;;  %v498_v32 = vld [vmem:[#allocation5 + $0x288] sm:$0xff] }
  0xa6   : > { %912 = vmatprep.subr.mxu0 %v2161_v0  ;;  %1077 = vmatprep.subr.mxu1 %v2161_v0 }
  0xa7   : > { %657 = vmatprep.mubr.f32.mxu0 %v2434_v11  ;;  %822 = vmatprep.mubr.f32.mxu1 %v2485_v33 }
  0xa8   : > { %913 = vmatpush1.msra.mxu0 %v489_v34  ;;  %1078 = vmatpush1.msra.mxu1 %v521_v35  ;;  %v530_v34 = vld [vmem:[#allocation5 + $0x388] sm:$0xff]  ;;  %v497_v35 = vld [vmem:[#allocation5 + $0x280] sm:$0xff] }
  0xa9   : > { %658 = vmatmul.mubr.f32.gmra.mxu0 %v2425_v8  ;;  %823 = vmatmul.mubr.f32.gmra.mxu1 %v2428_v9  ;;  %v539_v8 = vld [vmem:[#allocation5 + $0x3d0] sm:$0xff] }
  0xaa   : > { %914 = vmatprep.subr.mxu0 %v2161_v0  ;;  %1079 = vmatprep.subr.mxu1 %v2161_v0 }
  0xab   : > { %915 = vmatpush1.msra.mxu0 %v488_v36  ;;  %1080 = vmatpush1.msra.mxu1 %v520_v37  ;;  %v529_v36 = vld [vmem:[#allocation5 + $0x380] sm:$0xff]  ;;  %v560_v37 = vld [vmem:[#allocation5 + $0x478] sm:$0xff] }
  0xac   : > { %662 = vmatprep.mubr.f32.mxu0 %v2451_v19  ;;  %827 = vmatprep.mubr.f32.mxu1 %v2494_v38 }
  0xad   : > { %916 = vmatprep.subr.mxu0 %v2161_v0  ;;  %1081 = vmatprep.subr.mxu1 %v2161_v0 }
  0xae   : > { %663 = vmatmul.mubr.f32.gmra.mxu0 %v2442_v16  ;;  %828 = vmatmul.mubr.f32.gmra.mxu1 %v2445_v17  ;;  %v536_v16 = vld [vmem:[#allocation5 + $0x3b8] sm:$0xff] }
  0xaf   : > { %917 = vmatpush1.msra.mxu0 %v487_v39  ;;  %1082 = vmatpush1.msra.mxu1 %v519_v40  ;;  %v559_v39 = vld [vmem:[#allocation5 + $0x470] sm:$0xff]  ;;  %v556_v40 = vld [vmem:[#allocation5 + $0x458] sm:$0xff] }
  0xb0   : > { %918 = vmatprep.subr.mxu0 %v2161_v0  ;;  %1083 = vmatprep.subr.mxu1 %v2161_v0 }
  0xb1   : > { %919 = vmatpush1.msra.mxu0 %v486_v41  ;;  %1084 = vmatpush1.msra.mxu1 %v518_v42  ;;  %v2668_v41 = vld [vmem:[%s2403_s25 + $0x110] sm:$0xff] }
  0xb2   : > { %667 = vmatprep.mubr.f32.mxu0 %v2468_v27  ;;  %832 = vmatprep.mubr.f32.mxu1 %v2505_v43  ;;  %v555_v42 = vld [vmem:[#allocation5 + $0x450] sm:$0xff] }
  0xb3   : > { %668 = vmatmul.mubr.f32.gmra.mxu0 %v2459_v22  ;;  %833 = vmatmul.mubr.f32.gmra.mxu1 %v2462_v23  ;;  %v2607_v22 = vld [vmem:[%s2403_s25 + $0xe8] sm:$0xff] }
  0xb4   : > { %920 = vmatprep.subr.mxu0 %v2161_v0  ;;  %1085 = vmatprep.subr.mxu1 %v2161_v0 }
  0xb5   : > { %921 = vmatpush1.msra.mxu0 %v485_v44  ;;  %1086 = vmatpush1.msra.mxu1 %v517_v45  ;;  %v554_v44 = vld [vmem:[#allocation5 + $0x448] sm:$0xff]  ;;  %v2682_v45 = vld [vmem:[%s2403_s25 + $0x120] sm:$0xff] }
  0xb6   : > { %922 = vmatprep.subr.mxu0 %v2161_v0  ;;  %1087 = vmatprep.subr.mxu1 %v2161_v0 }
  0xb7   : > { %672 = vmatprep.mubr.f32.mxu0 %v2413_v3  ;;  %837 = vmatprep.mubr.f32.mxu1 %v2516_v46 }
  0xb8   : > { %923 = vmatpush1.msra.mxu0 %v484_v47  ;;  %1088 = vmatpush1.msra.mxu1 %v516_v48  ;;  %v2689_v47 = vld [vmem:[%s2403_s25 + $0x128] sm:$0xff]  ;;  %v552_v48 = vld [vmem:[#allocation5 + $0x438] sm:$0xff] }
  0xb9   : > { %673 = vmatmul.mubr.f32.gmra.mxu0 %v2419_v5  ;;  %838 = vmatmul.mubr.f32.gmra.mxu1 %v2474_v30  ;;  %v2567_v5 = vld [vmem:[%s2403_s25 + $0xc8] sm:$0xff] }
  0xba   : > { %924 = vmatprep.subr.mxu0 %v2161_v0  ;;  %1089 = vmatprep.subr.mxu1 %v2161_v0 }
  0xbb   : > { %925 = vmatpush1.msra.mxu0 %v483_v49  ;;  %1090 = vmatpush1.msra.mxu1 %v515_v50  ;;  %v2696_v49 = vld [vmem:[%s2403_s25 + $0x130] sm:$0xff] }
  0xbc   : > { %677 = vmatprep.mubr.f32.mxu0 %v2428_v9  ;;  %842 = vmatprep.mubr.f32.mxu1 %v2525_v51  ;;  %v551_v50 = vld [vmem:[#allocation5 + $0x430] sm:$0xff] }
  0xbd   : > { %926 = vmatprep.subr.mxu0 %v2161_v0  ;;  %1091 = vmatprep.subr.mxu1 %v2161_v0 }
  0xbe   : > { %678 = vmatmul.mubr.f32.gmra.mxu0 %v2434_v11  ;;  %843 = vmatmul.mubr.f32.gmra.mxu1 %v2485_v33  ;;  %v506_v11 = vld [vmem:[#allocation5 + $0x2c8] sm:$0xff] }
  0xbf   : > { %927 = vmatpush1.msra.mxu0 %v482_v52  ;;  %1092 = vmatpush1.msra.mxu1 %v514_v53  ;;  %v550_v52 = vld [vmem:[#allocation5 + $0x428] sm:$0xff]  ;;  %v2710_v53 = vld [vmem:[%s2403_s25 + $0x140] sm:$0xff] }
  0xc0   : > { %928 = vmatprep.subr.mxu0 %v2161_v0  ;;  %1093 = vmatprep.subr.mxu1 %v2161_v0 }
  0xc1   : > { %682 = vmatprep.mubr.f32.mxu0 %v2445_v17  ;;  %847 = vmatprep.mubr.f32.mxu1 %v2536_v54 }
  0xc2   : > { %929 = vmatpush1.msra.mxu0 %v481_v55  ;;  %1094 = vmatpush1.msra.mxu1 %v513_v56  ;;  %v2717_v55 = vld [vmem:[%s2403_s25 + $0x148] sm:$0xff]  ;;  %v548_v56 = vld [vmem:[#allocation5 + $0x418] sm:$0xff] }
  0xc3   : > { %683 = vmatmul.mubr.f32.gmra.mxu0 %v2451_v19  ;;  %848 = vmatmul.mubr.f32.gmra.mxu1 %v2494_v38  ;;  %v535_v19 = vld [vmem:[#allocation5 + $0x3b0] sm:$0xff] }
  0xc4   : > { %930 = vmatprep.subr.mxu0 %v2161_v0  ;;  %1095 = vmatprep.subr.mxu1 %v2161_v0 }
  0xc5   : > { %931 = vmatpush2.msra.mxu0 %v512_v57  ;;  %1096 = vmatpush2.msra.mxu1 %v544_v58  ;;  %v1694_v57 = vld [vmem:[%s2403_s25 + $0x150] sm:$0xff] }
  0xc6   : > { %687 = vmatprep.mubr.f32.mxu0 %v2462_v23  ;;  %852 = vmatprep.mubr.f32.mxu1 %v2545_v59  ;;  %v547_v58 = vld [vmem:[#allocation5 + $0x410] sm:$0xff] }
  0xc7   : > { %932 = vmatprep.subr.mxu0 %v2161_v0  ;;  %1097 = vmatprep.subr.mxu1 %v2161_v0 }
  0xc8   : > { %688 = vmatmul.mubr.f32.gmra.mxu0 %v2468_v27  ;;  %853 = vmatmul.mubr.f32.gmra.mxu1 %v2505_v43  ;;  %v532_v27 = vld [vmem:[#allocation5 + $0x398] sm:$0xff] }
  0xc9   : > { %933 = vmatpush2.msra.mxu0 %v511_v60  ;;  %1098 = vmatpush2.msra.mxu1 %v543_v61  ;;  %v546_v60 = vld [vmem:[#allocation5 + $0x408] sm:$0xff]  ;;  %v1696_v61 = vld [vmem:[%s2403_s25 + $0x160] sm:$0xff] }
  0xca   : > { %934 = vmatprep.subr.mxu0 %v2161_v0  ;;  %1099 = vmatprep.subr.mxu1 %v2161_v0 }
  0xcb   : > { %935 = vmatpush2.msra.mxu0 %v510_v62  ;;  %1100 = vmatpush2.msra.mxu1 %v542_v63  ;;  %v545_v62 = vld [vmem:[#allocation5 + $0x400] sm:$0xff]  ;;  %v1697_v63 = vld [vmem:[%s2403_s25 + $0x168] sm:$0xff] }
  0xcc   : > { %692 = vmatprep.mubr.f32.mxu0 %v2474_v30  ;;  %857 = vmatprep.mubr.f32.mxu1 %v2556_v1 }
  0xcd   : > { %693 = vmatmul.mubr.f32.gmra.mxu0 %v2413_v3  ;;  %858 = vmatmul.mubr.f32.gmra.mxu1 %v2516_v46  ;;  %v507_v3 = vld [vmem:[#allocation5 + $0x2d0] sm:$0xff] }
  0xce   : > { %936 = vmatprep.subr.mxu0 %v2161_v0  ;;  %1101 = vmatprep.subr.mxu1 %v2161_v0 }
  0xcf   : > { %937 = vmatpush2.msra.mxu0 %v509_v2  ;;  %1102 = vmatpush2.msra.mxu1 %v541_v4  ;;  %v1699_v2 = vld [vmem:[%s2403_s25 + $0x178] sm:$0xff]  ;;  %v1716_v4 = vld [vmem:[%s2403_s25 + $0x180] sm:$0xff] }
  0xd0   : > { %938 = vmatprep.subr.mxu0 %v2161_v0  ;;  %1103 = vmatprep.subr.mxu1 %v2161_v0 }
  0xd1   : > { %697 = vmatprep.mubr.f32.mxu0 %v2485_v33  ;;  %862 = vmatprep.mubr.f32.mxu1 %v2567_v5 }
  0xd2   : > { %939 = vmatpush2.msra.mxu0 %v508_v6  ;;  %1104 = vmatpush2.msra.mxu1 %v540_v7 }
  0xd3   : > { %698 = vmatmul.mubr.f32.gmra.mxu0 %v2428_v9  ;;  %863 = vmatmul.mubr.f32.gmra.mxu1 %v2525_v51  ;;  %v2587_v9 = vld [vmem:[%s2403_s25 + $0xd8] sm:$0xff] }
  0xd4   : > { %940 = vmatprep.subr.mxu0 %v2161_v0  ;;  %1105 = vmatprep.subr.mxu1 %v2161_v0 }
  0xd5   : > { %941 = vmatpush2.msra.mxu0 %v507_v3  ;;  %1106 = vmatpush2.msra.mxu1 %v539_v8  ;;  %v1717_v3 = vld [vmem:[%s2403_s25 + $0x188] sm:$0xff] }
  0xd6   : > { %702 = vmatprep.mubr.f32.mxu0 %v2494_v38  ;;  %867 = vmatprep.mubr.f32.mxu1 %v2576_v10 }
  0xd7   : > { %942 = vmatprep.subr.mxu0 %v2161_v0  ;;  %1107 = vmatprep.subr.mxu1 %v2161_v0 }
  0xd8   : > { %703 = vmatmul.mubr.f32.gmra.mxu0 %v2445_v17  ;;  %868 = vmatmul.mubr.f32.gmra.mxu1 %v2536_v54  ;;  %v2596_v17 = vld [vmem:[%s2403_s25 + $0xe0] sm:$0xff] }
  0xd9   : > { %943 = vmatpush2.msra.mxu0 %v506_v11  ;;  %1108 = vmatpush2.msra.mxu1 %v538_v12 }
  0xda   : > { %944 = vmatprep.subr.mxu0 %v2161_v0  ;;  %1109 = vmatprep.subr.mxu1 %v2161_v0 }
  0xdb   : > { %707 = vmatprep.mubr.f32.mxu0 %v2505_v43  ;;  %872 = vmatprep.mubr.f32.mxu1 %v2587_v9 }
  0xdc   : > { %945 = vmatpush2.msra.mxu0 %v505_v13  ;;  %1110 = vmatpush2.msra.mxu1 %v537_v14  ;;  %v1719_v13 = vld [vmem:[%s2403_s25 + $0x198] sm:$0xff] }
  0xdd   : > { %708 = vmatmul.mubr.f32.gmra.mxu0 %v2462_v23  ;;  %873 = vmatmul.mubr.f32.gmra.mxu1 %v2545_v59  ;;  %v501_v23 = vld [vmem:[#allocation5 + $0x2a0] sm:$0xff] }
  0xde   : > { %946 = vmatprep.subr.mxu0 %v2161_v0  ;;  %1111 = vmatprep.subr.mxu1 %v2161_v0 }
  0xdf   : > { %947 = vmatpush2.msra.mxu0 %v504_v15  ;;  %1112 = vmatpush2.msra.mxu1 %v536_v16 }
  0xe0   : > { %712 = vmatprep.mubr.f32.mxu0 %v2516_v46  ;;  %877 = vmatprep.mubr.f32.mxu1 %v2596_v17 }
  0xe1   : > { %948 = vmatprep.subr.mxu0 %v2161_v0  ;;  %1113 = vmatprep.subr.mxu1 %v2161_v0 }
  0xe2   : > { %713 = vmatmul.mubr.f32.gmra.mxu0 %v2474_v30  ;;  %878 = vmatmul.mubr.f32.gmra.mxu1 %v2556_v1 }
  0xe3   : > { %949 = vmatpush2.msra.mxu0 %v503_v18  ;;  %1114 = vmatpush2.msra.mxu1 %v535_v19 }
  0xe4   : > { %950 = vmatprep.subr.mxu0 %v2161_v0  ;;  %1115 = vmatprep.subr.mxu1 %v2161_v0 }
  0xe5   : > { %951 = vmatpush2.msra.mxu0 %v502_v20  ;;  %1116 = vmatpush2.msra.mxu1 %v534_v21 }
  0xe6   : > { %717 = vmatprep.mubr.f32.mxu0 %v2525_v51  ;;  %882 = vmatprep.mubr.f32.mxu1 %v2607_v22 }
  0xe7   : > { %718 = vmatmul.mubr.f32.gmra.mxu0 %v2485_v33  ;;  %883 = vmatmul.mubr.f32.gmra.mxu1 %v2567_v5 }
  0xe8   : > { %952 = vmatprep.subr.mxu0 %v2161_v0  ;;  %1117 = vmatprep.subr.mxu1 %v2161_v0 }
  0xe9   : > { %953 = vmatpush2.msra.mxu0 %v501_v23  ;;  %1118 = vmatpush2.msra.mxu1 %v533_v24 }
  0xea   : > { %954 = vmatprep.subr.mxu0 %v2161_v0  ;;  %1119 = vmatprep.subr.mxu1 %v2161_v0 }
  0xeb   : > { %722 = vmatprep.mubr.f32.mxu0 %v2536_v54  ;;  %887 = vmatprep.mubr.f32.mxu1 %v2618_v25 }
  0xec   : > { %955 = vmatpush2.msra.mxu0 %v500_v26  ;;  %1120 = vmatpush2.msra.mxu1 %v532_v27 }
  0xed   : > { %723 = vmatmul.mubr.f32.gmra.mxu0 %v2494_v38  ;;  %888 = vmatmul.mubr.f32.gmra.mxu1 %v2576_v10 }
  0xee   : > { %956 = vmatprep.subr.mxu0 %v2161_v0  ;;  %1121 = vmatprep.subr.mxu1 %v2161_v0 }
  0xef   : > { %957 = vmatpush2.msra.mxu0 %v499_v28  ;;  %1122 = vmatpush2.msra.mxu1 %v531_v29 }
  0xf0   : > { %727 = vmatprep.mubr.f32.mxu0 %v2545_v59  ;;  %892 = vmatprep.mubr.f32.mxu1 %v2627_v31 }
  0xf1   : > { %958 = vmatprep.subr.mxu0 %v2161_v0  ;;  %1123 = vmatprep.subr.mxu1 %v2161_v0 }
  0xf2   : > { %728 = vmatmul.mubr.f32.gmra.mxu0 %v2505_v43  ;;  %893 = vmatmul.mubr.f32.gmra.mxu1 %v2587_v9 }
  0xf3   : > { %959 = vmatpush2.msra.mxu0 %v498_v32  ;;  %1124 = vmatpush2.msra.mxu1 %v530_v34 }
  0xf4   : > { %960 = vmatprep.subr.mxu0 %v2161_v0  ;;  %1125 = vmatprep.subr.mxu1 %v2161_v0  ;;  %v558_v0 = vld [vmem:[#allocation5 + $0x468] sm:$0xff] }
  0xf5   : > { %961 = vmatpush2.msra.mxu0 %v497_v35  ;;  %962 = vmatprep.mubr.f32.mxu0 %v2516_v46 }
  0xf6   : > { %1126 = vmatpush2.msra.mxu1 %v529_v36  ;;  %1127 = vmatprep.mubr.f32.mxu1 %v2596_v17 }
  0xf7   : > { %963 = vmatmul.mubr.f32.vlgmr.msra.gmra.mxu0 %v2474_v30  ;;  %1128 = vmatmul.mubr.f32.vlgmr.msra.gmra.mxu1 %v2556_v1  ;;  %v2654_v30 = vld [vmem:[%s2403_s25 + $0x100] sm:$0xff] }
  0xf8   : > { %1760 = vmatprep.subr.mxu0 %v560_v37  ;;  %1822 = vmatprep.subr.mxu1 %v560_v37 }
  0xf9   : > { %1761 = vmatpush3.msra.mxu0 %v560_v37  ;;  %1838 = vmatpush3.msra.mxu1 %v560_v37 }
  0xfa   : > { %967 = vmatprep.mubr.f32.mxu0 %v2525_v51  ;;  %1132 = vmatprep.mubr.f32.mxu1 %v2607_v22 }
  0xfb   : > { %968 = vmatmul.mubr.f32.gmra.mxu0 %v2485_v33  ;;  %1133 = vmatmul.mubr.f32.gmra.mxu1 %v2567_v5  ;;  %v557_v33 = vld [vmem:[#allocation5 + $0x460] sm:$0xff] }
  0xfc   : > { %1762 = vmatprep.subr.mxu0 %v559_v39  ;;  %1823 = vmatprep.subr.mxu1 %v559_v39 }
  0xfd   : > { %1763 = vmatpush3.msra.mxu0 %v559_v39  ;;  %1839 = vmatpush3.msra.mxu1 %v559_v39 }
  0xfe   : > { %972 = vmatprep.mubr.f32.mxu0 %v2536_v54  ;;  %1137 = vmatprep.mubr.f32.mxu1 %v2618_v25 }
  0xff   : > { %973 = vmatmul.mubr.f32.gmra.mxu0 %v2494_v38  ;;  %1138 = vmatmul.mubr.f32.gmra.mxu1 %v2576_v10  ;;  %v2661_v38 = vld [vmem:[%s2403_s25 + $0x108] sm:$0xff] }
 0x100   : > { %1764 = vmatprep.subr.mxu0 %v558_v0  ;;  %1824 = vmatprep.subr.mxu1 %v558_v0 }
 0x101   : > { %977 = vmatprep.mubr.f32.mxu0 %v2545_v59  ;;  %1142 = vmatprep.mubr.f32.mxu1 %v2627_v31 }
 0x102   : > { %1765 = vmatpush3.msra.mxu0 %v558_v0  ;;  %1840 = vmatpush3.msra.mxu1 %v558_v0 }
 0x103   : > { %978 = vmatmul.mubr.f32.gmra.mxu0 %v2505_v43  ;;  %1143 = vmatmul.mubr.f32.gmra.mxu1 %v2587_v9  ;;  %v2675_v43 = vld [vmem:[%s2403_s25 + $0x118] sm:$0xff] }
 0x104   : > { %982 = vmatprep.mubr.f32.mxu0 %v2556_v1  ;;  %1147 = vmatprep.mubr.f32.mxu1 %v2654_v30 }
 0x105   : > { %1766 = vmatprep.subr.mxu0 %v557_v33  ;;  %1825 = vmatprep.subr.mxu1 %v557_v33 }
 0x106   : > { %1767 = vmatpush3.msra.mxu0 %v557_v33  ;;  %1841 = vmatpush3.msra.mxu1 %v557_v33 }
 0x107   : > { %983 = vmatmul.mubr.f32.gmra.mxu0 %v2516_v46  ;;  %1148 = vmatmul.mubr.f32.gmra.mxu1 %v2596_v17  ;;  %v553_v46 = vld [vmem:[#allocation5 + $0x440] sm:$0xff] }
 0x108   : > { %987 = vmatprep.mubr.f32.mxu0 %v2567_v5  ;;  %1152 = vmatprep.mubr.f32.mxu1 %v2661_v38 }
 0x109   : > { %1768 = vmatprep.subr.mxu0 %v556_v40  ;;  %1826 = vmatprep.subr.mxu1 %v556_v40 }
 0x10a   : > { %1769 = vmatpush3.msra.mxu0 %v556_v40  ;;  %1842 = vmatpush3.msra.mxu1 %v556_v40 }
 0x10b   : > { %988 = vmatmul.mubr.f32.gmra.mxu0 %v2525_v51  ;;  %1153 = vmatmul.mubr.f32.gmra.mxu1 %v2607_v22  ;;  %v2703_v51 = vld [vmem:[%s2403_s25 + $0x138] sm:$0xff] }
 0x10c   : > { %992 = vmatprep.mubr.f32.mxu0 %v2576_v10  ;;  %1157 = vmatprep.mubr.f32.mxu1 %v2668_v41 }
 0x10d   : > { %1770 = vmatprep.subr.mxu0 %v555_v42  ;;  %1827 = vmatprep.subr.mxu1 %v555_v42 }
 0x10e   : > { %1771 = vmatpush3.msra.mxu0 %v555_v42  ;;  %1843 = vmatpush3.msra.mxu1 %v555_v42 }
 0x10f   : > { %993 = vmatmul.mubr.f32.gmra.mxu0 %v2536_v54  ;;  %1158 = vmatmul.mubr.f32.gmra.mxu1 %v2618_v25  ;;  %v549_v54 = vld [vmem:[#allocation5 + $0x420] sm:$0xff] }
 0x110   : > { %997 = vmatprep.mubr.f32.mxu0 %v2587_v9  ;;  %1162 = vmatprep.mubr.f32.mxu1 %v2675_v43 }
 0x111   : > { %1772 = vmatprep.subr.mxu0 %v554_v44  ;;  %1828 = vmatprep.subr.mxu1 %v554_v44 }
 0x112   : > { %1773 = vmatpush3.msra.mxu0 %v554_v44  ;;  %1844 = vmatpush3.msra.mxu1 %v554_v44 }
 0x113   : > { %998 = vmatmul.mubr.f32.gmra.mxu0 %v2545_v59  ;;  %1163 = vmatmul.mubr.f32.gmra.mxu1 %v2627_v31  ;;  %v1695_v59 = vld [vmem:[%s2403_s25 + $0x158] sm:$0xff] }
 0x114   : > { %1002 = vmatprep.mubr.f32.mxu0 %v2596_v17  ;;  %1167 = vmatprep.mubr.f32.mxu1 %v2682_v45 }
 0x115   : > { %1774 = vmatprep.subr.mxu0 %v553_v46  ;;  %1829 = vmatprep.subr.mxu1 %v553_v46 }
 0x116   : > { %1775 = vmatpush3.msra.mxu0 %v553_v46  ;;  %1845 = vmatpush3.msra.mxu1 %v553_v46 }
 0x117   : > { %1003 = vmatmul.mubr.f32.gmra.mxu0 %v2556_v1  ;;  %1168 = vmatmul.mubr.f32.gmra.mxu1 %v2654_v30  ;;  %v1698_v1 = vld [vmem:[%s2403_s25 + $0x170] sm:$0xff] }
 0x118   : > { %1007 = vmatprep.mubr.f32.mxu0 %v2607_v22  ;;  %1172 = vmatprep.mubr.f32.mxu1 %v2689_v47 }
 0x119   : > { %1776 = vmatprep.subr.mxu0 %v552_v48  ;;  %1830 = vmatprep.subr.mxu1 %v552_v48 }
 0x11a   : > { %1777 = vmatpush3.msra.mxu0 %v552_v48  ;;  %1846 = vmatpush3.msra.mxu1 %v552_v48 }
 0x11b   : > { %1008 = vmatmul.mubr.f32.gmra.mxu0 %v2567_v5  ;;  %1173 = vmatmul.mubr.f32.gmra.mxu1 %v2661_v38  ;;  %v2756_v5 = vld [vmem:[%s2999_s2] ss:$0 sm:$0xff] }
 0x11c   : > { %1012 = vmatprep.mubr.f32.mxu0 %v2618_v25  ;;  %1177 = vmatprep.mubr.f32.mxu1 %v2696_v49 }
 0x11d   : > { %1778 = vmatprep.subr.mxu0 %v551_v50  ;;  %1831 = vmatprep.subr.mxu1 %v551_v50 }
 0x11e   : > { %1779 = vmatpush3.msra.mxu0 %v551_v50  ;;  %1847 = vmatpush3.msra.mxu1 %v551_v50 }
 0x11f   : > { %1013 = vmatmul.mubr.f32.gmra.mxu0 %v2576_v10  ;;  %1178 = vmatmul.mubr.f32.gmra.mxu1 %v2668_v41  ;;  %v1718_v10 = vld [vmem:[%s2403_s25 + $0x190] sm:$0xff]  ;;  %s2037_s25 = scalar_lea.vmem %s2036_s3, 5120 }
 0x120   : > { %1017 = vmatprep.mubr.f32.mxu0 %v2627_v31  ;;  %1182 = vmatprep.mubr.f32.mxu1 %v2703_v51  ;;  %p2039_p5 = scmp.lt.s32.totalorder %s2037_s25, %s2031_s6 }
 0x121   : > { %1780 = vmatprep.subr.mxu0 %v550_v52  ;;  %1832 = vmatprep.subr.mxu1 %v550_v52 }
 0x122   : > { %1781 = vmatpush3.msra.mxu0 %v550_v52  ;;  %1848 = vmatpush3.msra.mxu1 %v550_v52  ;;  %p2040_p6 = por %p2039_p5, %p2038_p13 }
 0x123   : > { %1018 = vmatmul.mubr.f32.gmra.mxu0 %v2587_v9  ;;  %1183 = vmatmul.mubr.f32.gmra.mxu1 %v2675_v43 }
 0x124   : > { %1022 = vmatprep.mubr.f32.mxu0 %v2654_v30  ;;  %1187 = vmatprep.mubr.f32.mxu1 %v2710_v53  ;;  %p2041_p8 = pnand %p2040_p6, %p2034_p0 }
 0x125   : > { %1782 = vmatprep.subr.mxu0 %v549_v54  ;;  %1833 = vmatprep.subr.mxu1 %v549_v54 }
 0x126   : > { %1783 = vmatpush3.msra.mxu0 %v549_v54  ;;  %1849 = vmatpush3.msra.mxu1 %v549_v54 }
 0x127   : > { %1023 = vmatmul.mubr.f32.gmra.mxu0 %v2596_v17  ;;  %1188 = vmatmul.mubr.f32.gmra.mxu1 %v2682_v45 }
 0x128   : > { %1027 = vmatprep.mubr.f32.mxu0 %v2661_v38  ;;  %1192 = vmatprep.mubr.f32.mxu1 %v2717_v55 }
 0x129   : > { %1784 = vmatprep.subr.mxu0 %v548_v56  ;;  %1834 = vmatprep.subr.mxu1 %v548_v56 }
 0x12a   : > { %1785 = vmatpush3.msra.mxu0 %v548_v56  ;;  %1850 = vmatpush3.msra.mxu1 %v548_v56 }
 0x12b   : > { %1028 = vmatmul.mubr.f32.gmra.mxu0 %v2607_v22  ;;  %1193 = vmatmul.mubr.f32.gmra.mxu1 %v2689_v47 }
 0x12c   : > { %1032 = vmatprep.mubr.f32.mxu0 %v2668_v41  ;;  %1197 = vmatprep.mubr.f32.mxu1 %v1694_v57 }
 0x12d   : > { %1786 = vmatprep.subr.mxu0 %v547_v58  ;;  %1835 = vmatprep.subr.mxu1 %v547_v58 }
 0x12e   : > { %1787 = vmatpush3.msra.mxu0 %v547_v58  ;;  %1851 = vmatpush3.msra.mxu1 %v547_v58 }
 0x12f   : > { %1033 = vmatmul.mubr.f32.gmra.mxu0 %v2618_v25  ;;  %1198 = vmatmul.mubr.f32.gmra.mxu1 %v2696_v49 }
 0x130   : > { %1037 = vmatprep.mubr.f32.mxu0 %v2675_v43  ;;  %1202 = vmatprep.mubr.f32.mxu1 %v1695_v59 }
 0x131   : > { %1788 = vmatprep.subr.mxu0 %v546_v60  ;;  %1836 = vmatprep.subr.mxu1 %v546_v60 }
 0x132   : > { %1789 = vmatpush3.msra.mxu0 %v546_v60  ;;  %1852 = vmatpush3.msra.mxu1 %v546_v60 }
 0x133   : > { %1038 = vmatmul.mubr.f32.gmra.mxu0 %v2627_v31  ;;  %1203 = vmatmul.mubr.f32.gmra.mxu1 %v2703_v51 }
 0x134   : > { %1042 = vmatprep.mubr.f32.mxu0 %v2682_v45  ;;  %1207 = vmatprep.mubr.f32.mxu1 %v1696_v61 }
 0x135   : > { %1790 = vmatprep.subr.mxu0 %v545_v62  ;;  %1837 = vmatprep.subr.mxu1 %v545_v62 }
 0x136   : > { %1791 = vmatpush3.msra.mxu0 %v545_v62  ;;  %1853 = vmatpush3.msra.mxu1 %v545_v62 }
 0x137   : > { %1043 = vmatmul.mubr.f32.gmra.mxu0 %v2654_v30  ;;  %1208 = vmatmul.mubr.f32.gmra.mxu1 %v2710_v53 }
 0x138   : > { %1047 = vmatprep.mubr.f32.mxu0 %v2689_v47  ;;  %1212 = vmatprep.mubr.f32.mxu1 %v1697_v63 }
 0x13b   : > { %1048 = vmatmul.mubr.f32.gmra.mxu0 %v2661_v38  ;;  %1213 = vmatmul.mubr.f32.gmra.mxu1 %v2717_v55 }
 0x13c   : > { %1052 = vmatprep.mubr.f32.mxu0 %v2696_v49  ;;  %1217 = vmatprep.mubr.f32.mxu1 %v1698_v1 }
 0x13f   : > { %1053 = vmatmul.mubr.f32.gmra.mxu0 %v2668_v41  ;;  %1218 = vmatmul.mubr.f32.gmra.mxu1 %v1694_v57 }
 0x140   : > { %1057 = vmatprep.mubr.f32.mxu0 %v2703_v51  ;;  %1222 = vmatprep.mubr.f32.mxu1 %v1699_v2 }
 0x143   : > { %1058 = vmatmul.mubr.f32.gmra.mxu0 %v2675_v43  ;;  %1223 = vmatmul.mubr.f32.gmra.mxu1 %v1695_v59 }
 0x144   : > { %1792 = vmatprep.mubr.f32.mxu0 %v2654_v30  ;;  %1807 = vmatprep.mubr.f32.mxu1 %v1694_v57 }
 0x147   : > { %1793 = vmatmul.mubr.f32.vlgmr.msra.gmra.mxu0 %v2661_v38  ;;  %1808 = vmatmul.mubr.f32.vlgmr.msra.gmra.mxu1 %v1695_v59 }
 0x148   : > { %1795 = vmatprep.mubr.f32.mxu0 %v2668_v41  ;;  %1810 = vmatprep.mubr.f32.mxu1 %v1696_v61 }
 0x14b   : > { %1796 = vmatmul.mubr.f32.gmra.mxu0 %v2675_v43  ;;  %1811 = vmatmul.mubr.f32.gmra.mxu1 %v1697_v63 }
 0x14c   : > { %1798 = vmatprep.mubr.f32.mxu0 %v2682_v45  ;;  %1813 = vmatprep.mubr.f32.mxu1 %v1698_v1 }
 0x14f   : > { %1799 = vmatmul.mubr.f32.gmra.mxu0 %v2689_v47  ;;  %1814 = vmatmul.mubr.f32.gmra.mxu1 %v1699_v2  ;;  %v634_v6 = vpop.f32.mrf.mxu0  ;;  %v799_v7 = vpop.f32.mrf.mxu1 }
 0x150   : > { %1801 = vmatprep.mubr.f32.mxu0 %v2696_v49  ;;  %1816 = vmatprep.mubr.f32.mxu1 %v1716_v4  ;;  %v635_v8 = vadd.f32 %v2756_v5, %v634_v6 }
 0x151   : > { %v636_v11 = vpop.f32.mrf.mxu0  ;;  %v801_v12 = vpop.f32.mrf.mxu1 }
 0x152   : > { %v2763_v9 = vadd.f32 %v799_v7, %v635_v8 }
 0x153   : > { %1802 = vmatmul.mubr.f32.gmra.mxu0 %v2703_v51  ;;  %1817 = vmatmul.mubr.f32.gmra.mxu1 %v1717_v3 }
 0x154   : > { %1804 = vmatprep.mubr.f32.mxu0 %v2710_v53  ;;  %1819 = vmatprep.mubr.f32.mxu1 %v1718_v10  ;;  %v639_v14 = vpop.f32.mrf.mxu0  ;;  %v804_v15 = vpop.f32.mrf.mxu1 }
 0x155   : > { %v640_v16 = vadd.f32 %v2756_v5, %v639_v14 }
 0x156   : > { %v641_v17 = vpop.f32.mrf.mxu0  ;;  %v806_v18 = vpop.f32.mrf.mxu1 }
 0x157   : > { %1805 = vmatmul.mubr.f32.gmra.mxu0 %v2717_v55  ;;  %1820 = vmatmul.mubr.f32.gmra.mxu1 %v1719_v13  ;;  %v2770_v19 = vadd.f32 %v804_v15, %v640_v16 }
 0x159   : > { %v644_v20 = vpop.f32.mrf.mxu0  ;;  %v809_v21 = vpop.f32.mrf.mxu1 }
 0x15a   : > { %v645_v22 = vadd.f32 %v2756_v5, %v644_v20 }
 0x15b   : > { %v646_v23 = vpop.f32.mrf.mxu0  ;;  %v811_v24 = vpop.f32.mrf.mxu1 }
 0x15c   : > { %v2773_v25 = vadd.f32 %v809_v21, %v645_v22 }
 0x15f   : > { %v649_v26 = vpop.f32.mrf.mxu0  ;;  %v814_v27 = vpop.f32.mrf.mxu1 }
 0x160   : > { %v650_v28 = vadd.f32 %v2756_v5, %v649_v26 }
 0x161   : > { %v651_v29 = vpop.f32.mrf.mxu0  ;;  %v816_v31 = vpop.f32.mrf.mxu1 }
 0x162   : > { %v2776_v32 = vadd.f32 %v814_v27, %v650_v28 }
 0x164   : > { %v654_v34 = vpop.f32.mrf.mxu0  ;;  %v819_v35 = vpop.f32.mrf.mxu1 }
 0x165   : > { %v655_v36 = vadd.f32 %v2756_v5, %v654_v34 }
 0x166   : > { %v656_v37 = vpop.f32.mrf.mxu0  ;;  %v821_v39 = vpop.f32.mrf.mxu1 }
 0x167   : > { %v2779_v0 = vadd.f32 %v819_v35, %v655_v36 }
 0x169   : > { %v659_v30 = vpop.f32.mrf.mxu0  ;;  %v824_v33 = vpop.f32.mrf.mxu1 }
 0x16a   : > { %v660_v38 = vadd.f32 %v2756_v5, %v659_v30 }
 0x16b   : > { %v661_v40 = vpop.f32.mrf.mxu0  ;;  %v826_v41 = vpop.f32.mrf.mxu1 }
 0x16c   : > { %v2782_v42 = vadd.f32 %v824_v33, %v660_v38 }
 0x16e   : > { %v664_v43 = vpop.f32.mrf.mxu0  ;;  %v829_v44 = vpop.f32.mrf.mxu1 }
 0x16f   : > { %v665_v45 = vadd.f32 %v2756_v5, %v664_v43 }
 0x170   : > { %v666_v46 = vpop.f32.mrf.mxu0  ;;  %v831_v47 = vpop.f32.mrf.mxu1 }
 0x171   : > { %v2785_v48 = vadd.f32 %v829_v44, %v665_v45 }
 0x173   : > { %v669_v49 = vpop.f32.mrf.mxu0  ;;  %v834_v50 = vpop.f32.mrf.mxu1 }
 0x174   : > { %v670_v51 = vadd.f32 %v2756_v5, %v669_v49 }
 0x175   : > { %v671_v52 = vpop.f32.mrf.mxu0  ;;  %v836_v53 = vpop.f32.mrf.mxu1 }
 0x176   : > { %v2788_v54 = vadd.f32 %v834_v50, %v670_v51 }
 0x179   : > { %v674_v55 = vpop.f32.mrf.mxu0  ;;  %v839_v56 = vpop.f32.mrf.mxu1 }
 0x17a   : > { %v675_v57 = vadd.f32 %v2756_v5, %v674_v55 }
 0x17b   : > { %v676_v58 = vpop.f32.mrf.mxu0  ;;  %v841_v59 = vpop.f32.mrf.mxu1 }
 0x17c   : > { %v2791_v60 = vadd.f32 %v839_v56, %v675_v57 }
 0x17e   : > { %v679_v61 = vpop.f32.mrf.mxu0  ;;  %v844_v62 = vpop.f32.mrf.mxu1 }
 0x17f   : > { %v680_v63 = vadd.f32 %v2756_v5, %v679_v61 }
 0x180   : > { %v681_v1 = vpop.f32.mrf.mxu0  ;;  %v846_v2 = vpop.f32.mrf.mxu1 }
 0x181   : > { %v2794_v4 = vadd.f32 %v844_v62, %v680_v63 }
 0x183   : > { %v684_v6 = vpop.f32.mrf.mxu0  ;;  %v849_v7 = vpop.f32.mrf.mxu1 }
 0x184   : > { %v685_v3 = vadd.f32 %v2756_v5, %v684_v6 }
 0x185   : > { %v686_v8 = vpop.f32.mrf.mxu0  ;;  %v851_v10 = vpop.f32.mrf.mxu1 }
 0x186   : > { %v2797_v11 = vadd.f32 %v849_v7, %v685_v3 }
 0x188   : > { %v689_v12 = vpop.f32.mrf.mxu0  ;;  %v854_v13 = vpop.f32.mrf.mxu1 }
 0x189   : > { %v690_v14 = vadd.f32 %v2756_v5, %v689_v12 }
 0x18a   : > { %v691_v15 = vpop.f32.mrf.mxu0  ;;  %v856_v16 = vpop.f32.mrf.mxu1 }
 0x18b   : > { %v2800_v17 = vadd.f32 %v854_v13, %v690_v14 }
 0x18d   : > { %v694_v18 = vpop.f32.mrf.mxu0  ;;  %v859_v20 = vpop.f32.mrf.mxu1 }
 0x18e   : > { %v695_v21 = vadd.f32 %v2756_v5, %v694_v18 }
 0x18f   : > { %v696_v22 = vpop.f32.mrf.mxu0  ;;  %v861_v23 = vpop.f32.mrf.mxu1 }
 0x190   : > { %v2803_v24 = vadd.f32 %v859_v20, %v695_v21 }
 0x193   : > { %v699_v26 = vpop.f32.mrf.mxu0  ;;  %v864_v27 = vpop.f32.mrf.mxu1 }
 0x194   : > { %v700_v28 = vadd.f32 %v2756_v5, %v699_v26 }
 0x195   : > { %v701_v29 = vpop.f32.mrf.mxu0  ;;  %v866_v31 = vpop.f32.mrf.mxu1 }
 0x196   : > { %v2806_v34 = vadd.f32 %v864_v27, %v700_v28 }
 0x198   : > { %v704_v35 = vpop.f32.mrf.mxu0  ;;  %v869_v36 = vpop.f32.mrf.mxu1 }
 0x199   : > { %v705_v37 = vadd.f32 %v2756_v5, %v704_v35 }
 0x19a   : > { %v706_v39 = vpop.f32.mrf.mxu0  ;;  %v871_v30 = vpop.f32.mrf.mxu1 }
 0x19b   : > { %v2809_v33 = vadd.f32 %v869_v36, %v705_v37 }
 0x19d   : > { %v709_v38 = vpop.f32.mrf.mxu0  ;;  %v874_v40 = vpop.f32.mrf.mxu1 }
 0x19e   : > { %v710_v41 = vadd.f32 %v2756_v5, %v709_v38 }
 0x19f   : > { %v711_v43 = vpop.f32.mrf.mxu0  ;;  %v876_v44 = vpop.f32.mrf.mxu1 }
 0x1a0   : > { %v2812_v45 = vadd.f32 %v874_v40, %v710_v41 }
 0x1a2   : > { %v714_v46 = vpop.f32.mrf.mxu0  ;;  %v879_v47 = vpop.f32.mrf.mxu1 }
 0x1a3   : > { %v715_v49 = vadd.f32 %v2756_v5, %v714_v46 }
 0x1a4   : > { %v716_v50 = vpop.f32.mrf.mxu0  ;;  %v881_v51 = vpop.f32.mrf.mxu1 }
 0x1a5   : > { %v2815_v52 = vadd.f32 %v879_v47, %v715_v49 }
 0x1a7   : > { %v719_v53 = vpop.f32.mrf.mxu0  ;;  %v884_v55 = vpop.f32.mrf.mxu1 }
 0x1a8   : > { %v720_v56 = vadd.f32 %v2756_v5, %v719_v53 }
 0x1a9   : > { %v721_v57 = vpop.f32.mrf.mxu0  ;;  %v886_v58 = vpop.f32.mrf.mxu1 }
 0x1aa   : > { %v2818_v59 = vadd.f32 %v884_v55, %v720_v56 }
 0x1ad   : > { %v724_v61 = vpop.f32.mrf.mxu0  ;;  %v889_v62 = vpop.f32.mrf.mxu1 }
 0x1ae   : > { %v725_v63 = vadd.f32 %v2756_v5, %v724_v61 }
 0x1af   : > { %v726_v1 = vpop.f32.mrf.mxu0  ;;  %v891_v2 = vpop.f32.mrf.mxu1 }
 0x1b0   : > { %v2821_v6 = vadd.f32 %v889_v62, %v725_v63 }
 0x1b2   : > { %v729_v7 = vpop.f32.mrf.mxu0  ;;  %v894_v3 = vpop.f32.mrf.mxu1 }
 0x1b3   : > { %v730_v8 = vadd.f32 %v2756_v5, %v729_v7 }
 0x1b4   : > { %v731_v10 = vpop.f32.mrf.mxu0  ;;  %v896_v12 = vpop.f32.mrf.mxu1 }
 0x1b5   : > { %v2824_v13 = vadd.f32 %v894_v3, %v730_v8 }
 0x1b7   : > { %v964_v14 = vpop.f32.mrf.mxu0  ;;  %v1129_v15 = vpop.f32.mrf.mxu1 }
 0x1b8   : > { %v965_v16 = vadd.f32 %v964_v14, %v2763_v9 }
 0x1b9   : > { %v966_v18 = vpop.f32.mrf.mxu0  ;;  %v1131_v20 = vpop.f32.mrf.mxu1 }
 0x1ba   : > { %v2827_v21 = vadd.f32 %v1129_v15, %v965_v16 }
 0x1bb   : > { %v969_v22 = vpop.f32.mrf.mxu0  ;;  %v1134_v23 = vpop.f32.mrf.mxu1 }
 0x1bc   : > { %v970_v26 = vadd.f32 %v969_v22, %v2770_v19 }
 0x1bd   : > { %v971_v27 = vpop.f32.mrf.mxu0  ;;  %v1136_v28 = vpop.f32.mrf.mxu1 }
 0x1be   : > { %v2830_v29 = vadd.f32 %v1134_v23, %v970_v26 }
 0x1bf   : > { %v974_v5 = vpop.f32.mrf.mxu0  ;;  %v1139_v31 = vpop.f32.mrf.mxu1 }
 0x1c0   : > { %v975_v35 = vadd.f32 %v974_v5, %v2773_v25 }
 0x1c1   : > { %v976_v36 = vpop.f32.mrf.mxu0  ;;  %v1141_v37 = vpop.f32.mrf.mxu1 }
 0x1c2   : > { %v2833_v39 = vadd.f32 %v1139_v31, %v975_v35 }
 0x1c3   : > { %v979_v9 = vpop.f32.mrf.mxu0  ;;  %v1144_v30 = vpop.f32.mrf.mxu1 }
 0x1c4   : > { %v980_v38 = vadd.f32 %v979_v9, %v2776_v32 }
 0x1c5   : > { %v981_v40 = vpop.f32.mrf.mxu0  ;;  %v1146_v41 = vpop.f32.mrf.mxu1 }
 0x1c6   : > { %v2836_v43 = vadd.f32 %v1144_v30, %v980_v38 }
 0x1c7   : > { %v984_v19 = vpop.f32.mrf.mxu0  ;;  %v1149_v44 = vpop.f32.mrf.mxu1 }
 0x1c8   : > { %v985_v46 = vadd.f32 %v984_v19, %v2779_v0 }
 0x1c9   : > { %v986_v47 = vpop.f32.mrf.mxu0  ;;  %v1151_v49 = vpop.f32.mrf.mxu1 }
 0x1ca   : > { %v2839_v50 = vadd.f32 %v1149_v44, %v985_v46 }
 0x1cb   : > { %v989_v25 = vpop.f32.mrf.mxu0  ;;  %v1154_v51 = vpop.f32.mrf.mxu1 }
 0x1cc   : > { %v990_v53 = vadd.f32 %v989_v25, %v2782_v42 }
 0x1cd   : > { %v991_v55 = vpop.f32.mrf.mxu0  ;;  %v1156_v56 = vpop.f32.mrf.mxu1 }
 0x1ce   : > { %v2842_v57 = vadd.f32 %v1154_v51, %v990_v53 }
 0x1cf   : > { %v994_v32 = vpop.f32.mrf.mxu0  ;;  %v1159_v58 = vpop.f32.mrf.mxu1 }
 0x1d0   : > { %v995_v61 = vadd.f32 %v994_v32, %v2785_v48 }
 0x1d1   : > { %v996_v62 = vpop.f32.mrf.mxu0  ;;  %v1161_v63 = vpop.f32.mrf.mxu1 }
 0x1d2   : > { %v2845_v1 = vadd.f32 %v1159_v58, %v995_v61 }
 0x1d3   : > { %v2847_v0 = vpop.f32.mrf.mxu0  ;;  %v2849_v2 = vpop.f32.mrf.mxu1 }
 0x1d5   : > { %v1001_v7 = vpop.f32.mrf.mxu0  ;;  %v1166_v3 = vpop.f32.mrf.mxu1 }
 0x1d7   : > { %v1004_v8 = vpop.f32.mrf.mxu0  ;;  %v1169_v42 = vpop.f32.mrf.mxu1 }
 0x1d8   : > { %v1005_v10 = vadd.f32 %v1004_v8, %v2791_v60 }
 0x1d9   : > { %v1006_v12 = vpop.f32.mrf.mxu0  ;;  %v1171_v14 = vpop.f32.mrf.mxu1 }
 0x1da   : > { %v2852_v15 = vadd.f32 %v1169_v42, %v1005_v10 }
 0x1db   : > { %v2854_v16 = vpop.f32.mrf.mxu0  ;;  %v2856_v48 = vpop.f32.mrf.mxu1 }
 0x1dd   : > { %v1011_v18 = vpop.f32.mrf.mxu0  ;;  %v1176_v20 = vpop.f32.mrf.mxu1 }
 0x1df   : > { %v1014_v22 = vpop.f32.mrf.mxu0  ;;  %v1179_v23 = vpop.f32.mrf.mxu1 }
 0x1e0   : > { %v1015_v20 = vadd.f32 %v1014_v22, %v2797_v11 }
 0x1e1   : > { %v1016_v26 = vpop.f32.mrf.mxu0  ;;  %v1181_v27 = vpop.f32.mrf.mxu1 }
 0x1e3   : > { %v1019_v28 = vpop.f32.mrf.mxu0  ;;  %v1184_v5 = vpop.f32.mrf.mxu1 }
 0x1e4   : > { %v1020_v12 = vadd.f32 %v1019_v28, %v2800_v17 }
 0x1e5   : > { %v1021_v31 = vpop.f32.mrf.mxu0  ;;  %v1186_v35 = vpop.f32.mrf.mxu1 }
 0x1e6   : > { %v1185_v31 = vadd.f32 %v1184_v5, %v1020_v12 }
 0x1e7   : > { %v1024_v36 = vpop.f32.mrf.mxu0  ;;  %v1189_v60 = vpop.f32.mrf.mxu1 }
 0x1e9   : > { %v1026_v37 = vpop.f32.mrf.mxu0  ;;  %v1191_v9 = vpop.f32.mrf.mxu1 }
 0x1eb   : > { %v1029_v30 = vpop.f32.mrf.mxu0  ;;  %v1194_v38 = vpop.f32.mrf.mxu1 }
 0x1ec   : > { %v1030_v35 = vadd.f32 %v1029_v30, %v2806_v34 }
 0x1ed   : > { %v1031_v40 = vpop.f32.mrf.mxu0  ;;  %v1196_v41 = vpop.f32.mrf.mxu1 }
 0x1ee   : > { %v1180_v40 = vadd.f32 %v1179_v23, %v1015_v20  ;;  %v1025_v41 = vadd.f32 %v1024_v36, %v2803_v24  ;;  %v1000_v36 = vadd.f32 %v2847_v0, %v2788_v54 }
 0x1ef   : > { %v1034_v19 = vpop.f32.mrf.mxu0  ;;  %v2858_v44 = vpop.f32.mrf.mxu1 }
 0x1f0   : > { %v1190_v22 = vadd.f32 %v1189_v60, %v1025_v41  ;;  %v1035_v23 = vadd.f32 %v1034_v19, %v2809_v33 }
 0x1f1   : > { %v1036_v46 = vpop.f32.mrf.mxu0  ;;  %v1201_v47 = vpop.f32.mrf.mxu1 }
 0x1f3   : > { %v1039_v49 = vpop.f32.mrf.mxu0  ;;  %v1204_v25 = vpop.f32.mrf.mxu1 }
 0x1f5   : > { %v1041_v51 = vpop.f32.mrf.mxu0  ;;  %v1206_v53 = vpop.f32.mrf.mxu1 }
 0x1f6   : > { %v1195_v51 = vadd.f32 %v1194_v38, %v1030_v35  ;;  %v1040_v53 = vadd.f32 %v1039_v49, %v2812_v45 }
 0x1f7   : > { %v1044_v55 = vpop.f32.mrf.mxu0  ;;  %v2860_v56 = vpop.f32.mrf.mxu1 }
 0x1f8   : > { %v1205_v38 = vadd.f32 %v1204_v25, %v1040_v53  ;;  %v1045_v54 = vadd.f32 %v1044_v55, %v2815_v52  ;;  %v1165_v25 = vadd.f32 %v2849_v2, %v1000_v36 }
 0x1f9   : > { %v1046_v32 = vpop.f32.mrf.mxu0  ;;  %v1211_v58 = vpop.f32.mrf.mxu1 }
 0x1fa   : > { %v1200_v32 = vadd.f32 %v2858_v44, %v1035_v23  ;;  %v1210_v2 = vadd.f32 %v2860_v56, %v1045_v54 }
 0x1fb   : > { %v1049_v61 = vpop.f32.mrf.mxu0  ;;  %v2862_v62 = vpop.f32.mrf.mxu1 }
 0x1fc   : > { %v1050_v49 = vadd.f32 %v1049_v61, %v2818_v59 }
 0x1fd   : > { %v1051_v63 = vpop.f32.mrf.mxu0  ;;  %v1216_v7 = vpop.f32.mrf.mxu1 }
 0x1fe   : > { %v1215_v63 = vadd.f32 %v2862_v62, %v1050_v49 }
 0x1ff   : > { %v2864_v3 = vpop.f32.mrf.mxu0  ;;  %v2866_v8 = vpop.f32.mrf.mxu1 }
 0x201   : > { %v1056_v42 = vpop.f32.mrf.mxu0  ;;  %v1221_v10 = vpop.f32.mrf.mxu1 }
 0x203   : > { %v1059_v14 = vpop.f32.mrf.mxu0  ;;  %v2870_v18 = vpop.f32.mrf.mxu1 }
 0x204   : > { %v1060_v44 = vadd.f32 %v1059_v14, %v2824_v13 }
 0x205   : > { %v1061_v26 = vpop.f32.mrf.mxu0  ;;  %v1226_v27 = vpop.f32.mrf.mxu1 }
 0x206   : > { %v1225_v10 = vadd.f32 %v2870_v18, %v1060_v44 }
 0x207   : > { %v1794_v37 = vpop.f32.mrf.mxu0  ;;  %v1809_v9 = vpop.f32.mrf.mxu1 }
 0x208   : > { %v1300_v46 = vadd.f32 %v1794_v37, %v2830_v29  ;;  %v1350_v17 = vadd.f32 %v1809_v9, %v1185_v31 }
 0x209   : > { %v1294_v28 = vpop.f32.mrf.mxu0  ;;  %v1344_v47 = vpop.f32.mrf.mxu1 }
 0x20a   : > { %1394 = vst [vmem:[%s2879_s10 + $0x8] sm:$0xff] %v1300_v46  ;;  %1404 = vst [vmem:[%s2879_s10 + $0x58] sm:$0xff] %v1350_v17  ;;  %v1295_v11 = vadd.f32 %v1294_v28, %v2827_v21  ;;  %v1345_v24 = vadd.f32 %v1344_v47, %v1180_v40 }
 0x20b   : > { %v1797_v34 = vpop.f32.mrf.mxu0  ;;  %v1812_v29 = vpop.f32.mrf.mxu1 }
 0x20c   : > { %1393 = vst [vmem:[%s2879_s10] sm:$0xff] %v1295_v11  ;;  %1403 = vst [vmem:[%s2879_s10 + $0x50] sm:$0xff] %v1345_v24  ;;  %v1310_v45 = vadd.f32 %v1797_v34, %v2836_v43  ;;  %v1360_v5 = vadd.f32 %v1812_v29, %v1195_v51 }
 0x20d   : > { %v1304_v21 = vpop.f32.mrf.mxu0  ;;  %v1354_v30 = vpop.f32.mrf.mxu1 }
 0x20e   : > { %1396 = vst [vmem:[%s2879_s10 + $0x18] sm:$0xff] %v1310_v45  ;;  %1406 = vst [vmem:[%s2879_s10 + $0x68] sm:$0xff] %v1360_v5  ;;  %v1305_v33 = vadd.f32 %v1304_v21, %v2833_v39  ;;  %v1355_v60 = vadd.f32 %v1354_v30, %v1190_v22  ;;  %v1010_v39 = vadd.f32 %v2854_v16, %v2794_v4 }
 0x20f   : > { %v1800_v19 = vpop.f32.mrf.mxu0  ;;  %v1815_v43 = vpop.f32.mrf.mxu1  ;;  %v1055_v4 = vadd.f32 %v2864_v3, %v2821_v6 }
 0x210   : > { %1395 = vst [vmem:[%s2879_s10 + $0x10] sm:$0xff] %v1305_v33  ;;  %1405 = vst [vmem:[%s2879_s10 + $0x60] sm:$0xff] %v1355_v60  ;;  %v1320_v0 = vadd.f32 %v1800_v19, %v2842_v57  ;;  %v1370_v59 = vadd.f32 %v1815_v43, %v1205_v38 }
 0x211   : > { %v1314_v58 = vpop.f32.mrf.mxu0  ;;  %v1364_v61 = vpop.f32.mrf.mxu1  ;;  %v1220_v14 = vadd.f32 %v2866_v8, %v1055_v4 }
 0x212   : > { %1398 = vst [vmem:[%s2879_s10 + $0x28] sm:$0xff] %v1320_v0  ;;  %1408 = vst [vmem:[%s2879_s10 + $0x78] sm:$0xff] %v1370_v59  ;;  %v1315_v52 = vadd.f32 %v1314_v58, %v2839_v50  ;;  %v1365_v57 = vadd.f32 %v1364_v61, %v1200_v32  ;;  %v1175_v50 = vadd.f32 %v2856_v48, %v1010_v39 }
 0x213   : > { %v1803_v55 = vpop.f32.mrf.mxu0  ;;  %v1818_v7 = vpop.f32.mrf.mxu1 }
 0x214   : > { %1397 = vst [vmem:[%s2879_s10 + $0x20] sm:$0xff] %v1315_v52  ;;  %1407 = vst [vmem:[%s2879_s10 + $0x70] sm:$0xff] %v1365_v57  ;;  %v1330_v13 = vadd.f32 %v1803_v55, %v1165_v25  ;;  %v1380_v16 = vadd.f32 %v1818_v7, %v1215_v63 }
 0x215   : > { %v1324_v62 = vpop.f32.mrf.mxu0  ;;  %v1374_v42 = vpop.f32.mrf.mxu1 }
 0x216   : > { %1400 = vst [vmem:[%s2879_s10 + $0x38] sm:$0xff] %v1330_v13  ;;  %1410 = vst [vmem:[%s2879_s10 + $0x88] sm:$0xff] %v1380_v16  ;;  %v1325_v56 = vadd.f32 %v1324_v62, %v2845_v1  ;;  %v1375_v12 = vadd.f32 %v1374_v42, %v1210_v2 }
 0x217   : > { %v1806_v6 = vpop.f32.mrf.mxu0  ;;  %v1821_v3 = vpop.f32.mrf.mxu1 }
 0x218   : > { %1399 = vst [vmem:[%s2879_s10 + $0x30] sm:$0xff] %v1325_v56  ;;  %1409 = vst [vmem:[%s2879_s10 + $0x80] sm:$0xff] %v1375_v12  ;;  %v1340_v48 = vadd.f32 %v1806_v6, %v1175_v50  ;;  %v1390_v18 = vadd.f32 %v1821_v3, %v1225_v10 }
 0x219   : > { %v1334_v20 = vpop.f32.mrf.mxu0  ;;  %v1384_v26 = vpop.f32.mrf.mxu1 }
 0x21a   : > { %1402 = vst [vmem:[%s2879_s10 + $0x48] sm:$0xff] %v1340_v48  ;;  %1412 = vst [vmem:[%s2879_s10 + $0x98] sm:$0xff] %v1390_v18  ;;  %v1335_v1 = vadd.f32 %v1334_v20, %v2852_v15  ;;  %v1385_v8 = vadd.f32 %v1384_v26, %v1220_v14 }
 0x21c   : > { %1401 = vst [vmem:[%s2879_s10 + $0x40] sm:$0xff] %v1335_v1  ;;  %1411 = vst [vmem:[%s2879_s10 + $0x90] sm:$0xff] %v1385_v8 }
 0x21d   : > { %2044 = shalt.err (!%p2041_p8)
}
 0x21e   : > { %s2045_s27 = scalar_lea.hbm %s2926_s4, 2560  ;;  %s2049_s15 = scalar_lea.hbm %s3028_s24, 20480 }
 0x21f   : > { %p2046_p7 = scmp.ne.s32.totalorder %s2926_s4, %s2045_s27  ;;  %p2050_p12 = scmp.lt.s32.totalorder %s2926_s4, %s3028_s24 }
 0x220   : > { %p2051_p2 = scmp.lt.s32.totalorder %s2049_s15, %s2045_s27 }
 0x221   : > { %p2047_p9 = pnand %p2046_p7, %p3029_p3 }
 0x222   : > { %p2052_p4 = por %p2051_p2, %p2050_p12 }
 0x223   : > { %p2048_p10 = pneg %p2047_p9 }
 0x225   : > { %p2053_p1 = pnand %p2052_p4, %p2048_p10 }
 0x227   : > { %2056 = shalt.err (!%p2053_p1)
}
 0x228   : > { %s2163_s23 = smov 128   ;;  %s2164_s18 = smov 8  }
 0x229   : > { %1865 = dma.vmem_to_hbm [thread:$0]  (%p3029_p3), %s2928_s26, 2560, %s2926_s4, %s2937_s5, %s2163_s23, %s2163_s23, %s2164_s18  }
 0x22a PF: > { %s3030_s19 = sld [smem:[#allocation11_spill]]  ;;  %p1882_p11 = scmp.ge.s32.totalorder %s2155_s22, 2 }
 0x22b   : > { %s3031_s20 = sld [smem:[#allocation13_spill]] }
 0x230   : > { %s1444_s11 = sand.u32 1, %s3030_s19  }
 0x231   : > { %p3032_p0 = scmp.ne.s32.totalorder %s3031_s20, 0  ;;  %s1445_s12 = scalar_lea.sflag [#allocation4], %s1444_s11 }
 0x233   : > { %p1876_p13 = pnand %p1882_p11, %p3032_p0 }
 0x235   : > { %p1877_p5 = pneg %p1876_p13 }
 0x237   : > { %2110 = dma.done.wait (%p1877_p5), %s1445_s12, 2560  }
 0x238   : > { %2112 = vsyncadd (%p1877_p5), %s1445_s12, 4294964736  ;;  %s20_s22 = sadd.s32 1, %s2155_s22   ;;  %s3033_s18 = sld [smem:[#allocation12_spill]] }
 0x239   : > { %p17_p6 = scmp.ge.s32.totalorder %s20_s22, 10   ;;  %s3034_s20 = sld [smem:[#allocation14_spill]] }
 0x23a   : > { %s3035_s28 = sld [smem:[#allocation15_spill]]  ;;  %s3036_s12 = smov %s2119_s13 }
 0x23b   : > { %s3037_s13 = smov %s2123_s14  ;;  %s3038_s14 = smov %s2308_s1 }
 0x23c   : > { %s3039_s15 = smov %s2131_s16  ;;  %s3040_s16 = smov %s2135_s17 }
 0x23d   : > { %s3041_s17 = smov %s2303_s8  ;;  %s3042_s19 = smov %s2151_s21 }
 0x23e   :  { %19 = sbr.rel (!%p17_p6) target bundleno = 13 (0xd), region = 90 }
 0x240   : > { %s3043_s21 = smov %s3035_s28 }
 0x243   :  { %1450 = vsyncpa [#allocation3], 1 }
 0x244   :  { %1452 = vsyncpa [#allocation3 + $0x1], 1 }
 0x245   :  { %1453 = vsyncpa [#allocation6], 1 }
 0x246   :  { %1454 = vsyncpa [#allocation4], 1 }
 0x247   :  { %1456 = vsyncpa [#allocation4 + $0x1], 1 }

</bundles_post_ra>
